<compile_context>
chip_gen: v7x
topology: tpu7x:2x2x1
jax: 0.10.0
libtpu: 0.0.40
codegen_flags: <defaults>
</compile_context>

<pallas_src>
import functools

import jax
import jax.numpy as jnp
import numpy as np
from jax.experimental import pallas as pl
from jax.experimental.pallas import tpu as pltpu


TN = 128                       # output-channel (lane) tile
_VMEM_LIMIT = 32 * 1024 * 1024


# --------------------------------- kernel ---------------------------------- #
def _mpq_conv_kernel(scales_ref, x_ref, w_ref, b_ref, o_ref,
                     *, kh, kw, oh, ow, c, stride):
    """Fused im2col + parametric-quant conv for one image / one N tile.

    scales_ref: SMEM (6,)  = [step_w, qmax_w, 1/step_w, step_b, qmax_b, 1/step_b]
    x_ref:      VMEM (Hp, Wp, C)      padded NHWC image
    w_ref:      VMEM (KH*KW, C, TN)   raw weights (quantized in-kernel)
    b_ref:      VMEM (1, TN)          raw bias
    o_ref:      VMEM (OH*OW, TN)      f32 output block (also the accumulator)
    """
    step_w, qmax_w, inv_w = scales_ref[0], scales_ref[1], scales_ref[2]
    step_b, qmax_b, inv_b = scales_ref[3], scales_ref[4], scales_ref[5]

    # Quantized bias initializes the resident output block (no zeros pass,
    # no finalize add, no scratch accumulator).
    b_q = step_b * jnp.round(jnp.clip(b_ref[...], -qmax_b, qmax_b) * inv_b)
    o_ref[...] = jnp.broadcast_to(b_q, o_ref.shape)

    # Static unroll over the KH*KW taps; each tap is a (OH*OW, C) x (C, TN)
    # MXU matmul accumulated straight into o_ref.  x is read from HBM once.
    for kk in range(kh * kw):
        ki, kj = kk // kw, kk % kw
        if stride == 1:
            xs = x_ref[pl.ds(ki, oh), pl.ds(kj, ow), :]
        else:
            xs = x_ref[pl.ds(ki, oh, stride), pl.ds(kj, ow, stride), :]
        xs2 = xs.reshape(oh * ow, c)                      # layout-trivial when OW % 8 == 0

        # Per-tap weight quantization: step * round(clamp(w) * inv_step).
        # VPU filler under the MXU/DMA slots (weight tile is tiny).
        w_q = step_w * jnp.round(jnp.clip(w_ref[kk], -qmax_w, qmax_w) * inv_w)

        o_ref[...] += jnp.dot(xs2, w_q, preferred_element_type=jnp.float32)


# ----------------------------- JAX wrappers -------------------------------- #
def _clip_quant_params(step, qmax,
                       step_min=2.0 ** -8, step_max=1.0,
                       qmax_min=2.0 ** -8, qmax_max=255.0):
    """Quantizer._clip_params: clamp, snap step to a power of two."""
    step = jnp.clip(step, step_min, step_max)
    step = 2.0 ** jnp.round(jnp.log2(step))
    qmax = jnp.clip(qmax, qmax_min, qmax_max)
    inv_step = 1.0 / step          # exact: step is a power of two
    return step, qmax, inv_step


@functools.partial(jax.jit, static_argnames=("stride", "padding"))
def mpq_conv2d(x, weight, bias, qw_step, qw_qmax, qb_step, qb_qmax,
               stride=1, padding=1):
    """Forward of MPQConv2d (both quantizers activated, signed).

    x:      (B, C, H, W)   NCHW, as in PyTorch
    weight: (O, C, KH, KW) OIHW
    bias:   (O,)
    returns (B, O, OH, OW)
    """
    b_sz, c_in, h, w = x.shape
    c_out, c_in2, kh, kw = weight.shape
    assert c_in == c_in2

    oh = (h + 2 * padding - kh) // stride + 1
    ow = (w + 2 * padding - kw) // stride + 1
    hp, wp = h + 2 * padding, w + 2 * padding
    m_img = oh * ow

    # Scalar quantizer glue (Quantizer._clip_params) -> SMEM scales.
    step_w, qmax_w, inv_w = _clip_quant_params(qw_step, qw_qmax)
    step_b, qmax_b, inv_b = _clip_quant_params(qb_step, qb_qmax)
    scales = jnp.stack([step_w, qmax_w, inv_w,
                        step_b, qmax_b, inv_b]).astype(jnp.float32)

    # NCHW -> padded NHWC (one XLA pass over x; the kernel then reads it once).
    x_nhwc = jnp.transpose(x, (0, 2, 3, 1)).astype(jnp.float32)
    x_pad = jnp.pad(x_nhwc, ((0, 0), (padding, padding),
                             (padding, padding), (0, 0)))

    # Weight OIHW -> (KH*KW, C, Npad) raw (quantized inside the kernel).
    n_pad = pl.cdiv(c_out, TN) * TN
    w_r = jnp.transpose(weight, (2, 3, 1, 0)).reshape(kh * kw, c_in, c_out)
    w_p = jnp.pad(w_r.astype(jnp.float32), ((0, 0), (0, 0), (0, n_pad - c_out)))
    bias_p = jnp.pad(bias.astype(jnp.float32).reshape(1, c_out),
                     ((0, 0), (0, n_pad - c_out)))

    n_tiles = n_pad // TN
    kernel = functools.partial(_mpq_conv_kernel, kh=kh, kw=kw, oh=oh, ow=ow,
                               c=c_in, stride=stride)

    # De-inflated traffic: x read once, small weight/bias, lane-dense output.
    cost = pl.CostEstimate(
        flops=2 * b_sz * m_img * kh * kw * c_in * n_pad,
        transcendentals=0,
        bytes_accessed=4 * (b_sz * hp * wp * c_in
                            + kh * kw * c_in * n_pad + n_pad
                            + b_sz * m_img * n_pad),
    )

    y_mat = pl.pallas_call(
        kernel,
        out_shape=jax.ShapeDtypeStruct((b_sz, m_img, n_pad), jnp.float32),
        grid_spec=pltpu.PrefetchScalarGridSpec(
            num_scalar_prefetch=0,
            grid=(b_sz, n_tiles),
            in_specs=[
                pl.BlockSpec(memory_space=pltpu.MemorySpace.SMEM),        # scales
                pl.BlockSpec((None, hp, wp, c_in), lambda b, j: (b, 0, 0, 0)),
                pl.BlockSpec((kh * kw, c_in, TN), lambda b, j: (0, 0, j)),
                pl.BlockSpec((1, TN), lambda b, j: (0, j)),
            ],
            out_specs=pl.BlockSpec((None, m_img, TN), lambda b, j: (b, 0, j)),
        ),
        compiler_params=pltpu.CompilerParams(
            dimension_semantics=("parallel", "parallel"),
            vmem_limit_bytes=_VMEM_LIMIT),
        cost_estimate=cost,
    )(scales, x_pad, w_p, bias_p)

    # Un-pad channels, un-flatten spatial, back to NCHW (module interface).
    y = y_mat[:, :, :c_out].reshape(b_sz, oh, ow, c_out)
    return jnp.transpose(y, (0, 3, 1, 2))


# --------------------------- Reference (pure JAX) --------------------------- #
def mpq_conv2d_ref(x, weight, bias, qw_step, qw_qmax, qb_step, qb_qmax,
                   stride=1, padding=1):
    step_w, qmax_w, _ = _clip_quant_params(qw_step, qw_qmax)
    step_b, qmax_b, _ = _clip_quant_params(qb_step, qb_qmax)
    w_q = step_w * jnp.round(jnp.clip(weight, -qmax_w, qmax_w) / step_w)
    b_q = step_b * jnp.round(jnp.clip(bias, -qmax_b, qmax_b) / step_b)
    y = jax.lax.conv_general_dilated(
        x, w_q, window_strides=(stride, stride),
        padding=[(padding, padding), (padding, padding)],
        dimension_numbers=("NCHW", "OIHW", "NCHW"),
        precision=jax.lax.Precision.HIGHEST)
    return y + b_q[None, :, None, None]


# --------------------------------- main ------------------------------------ #
if __name__ == "__main__":
    B, C_in, H, W = 2, 4, 16, 16
    C_out, KH, KW = 8, 3, 3
    stride, padding = 1, 1

    key = jax.random.PRNGKey(0)
    kx, kw_, kb = jax.random.split(key, 3)

    # Deterministic "nn.Conv2d" init: U(-1/sqrt(fan_in), 1/sqrt(fan_in)).
    fan_in = C_in * KH * KW
    bound = 1.0 / np.sqrt(fan_in)
    weight = jax.random.uniform(kw_, (C_out, C_in, KH, KW),
                                jnp.float32, -bound, bound)
    bias = jax.random.uniform(kb, (C_out,), jnp.float32, -bound, bound)
    x = jax.random.normal(kx, (B, C_in, H, W), jnp.float32)

    # Quantizer defaults from __init__: step = 2**-3, qmax = 1.0 (signed).
    qw_step, qw_qmax = jnp.float32(2.0 ** -3), jnp.float32(1.0)
    qb_step, qb_qmax = jnp.float32(2.0 ** -3), jnp.float32(1.0)

    y = mpq_conv2d(x, weight, bias, qw_step, qw_qmax, qb_step, qb_qmax,
                   stride=stride, padding=padding)
    y = jax.block_until_ready(y)

    y_ref = mpq_conv2d_ref(x, weight, bias, qw_step, qw_qmax, qb_step, qb_qmax,
                           stride=stride, padding=padding)
    np.testing.assert_allclose(np.asarray(y), np.asarray(y_ref),
                               rtol=1e-4, atol=1e-4)
    print("KERNEL_OK")
</pallas_src>

<mosaic_0001>
module attributes {stable_mosaic.version = 11 : i64} {
  func.func @_mpq_conv_kernel(%arg0: i32, %arg1: i32, %arg2: memref<6xf32, #tpu.memory_space<smem>>, %arg3: memref<1x18x18x4xf32, #tpu.memory_space<vmem>>, %arg4: memref<9x4x128xf32, #tpu.memory_space<vmem>>, %arg5: memref<1x128xf32, #tpu.memory_space<vmem>>, %arg6: memref<1x256x128xf32, #tpu.memory_space<vmem>>) attributes {dimension_semantics = [#tpu.dimension_semantics<parallel>, #tpu.dimension_semantics<parallel>], iteration_bounds = array<i64: 2, 1>, scalar_prefetch = 0 : i64, scratch_operands = 0 : i64, tpu.core_type = #tpu.core_type<tc>, window_params = [{transform_indices = @transform_0, window_bounds = array<i64: 6>}, {transform_indices = @transform_1, window_bounds = array<i64: 1, 18, 18, 4>}, {transform_indices = @transform_2, window_bounds = array<i64: 9, 4, 128>}, {transform_indices = @transform_3, window_bounds = array<i64: 1, 128>}, {transform_indices = @transform_4, window_bounds = array<i64: 1, 256, 128>}]} {
    %c0 = arith.constant 0 : index
    %0 = memref.load %arg2[%c0] : memref<6xf32, #tpu.memory_space<smem>>
    %c1 = arith.constant 1 : index
    %1 = memref.load %arg2[%c1] : memref<6xf32, #tpu.memory_space<smem>>
    %c2 = arith.constant 2 : index
    %2 = memref.load %arg2[%c2] : memref<6xf32, #tpu.memory_space<smem>>
    %c3 = arith.constant 3 : index
    %3 = memref.load %arg2[%c3] : memref<6xf32, #tpu.memory_space<smem>>
    %c4 = arith.constant 4 : index
    %4 = memref.load %arg2[%c4] : memref<6xf32, #tpu.memory_space<smem>>
    %c5 = arith.constant 5 : index
    %5 = memref.load %arg2[%c5] : memref<6xf32, #tpu.memory_space<smem>>
    %c0_0 = arith.constant 0 : index
    %c0_1 = arith.constant 0 : index
    %6 = vector.load %arg5[%c0_0, %c0_1] : memref<1x128xf32, #tpu.memory_space<vmem>>, vector<1x128xf32>
    %cst = arith.constant 0.000000e+00 : f32
    %7 = arith.subf %cst, %4 : f32
    %8 = vector.broadcast %7 : f32 to vector<1x128xf32>
    %9 = arith.maximumf %8, %6 : vector<1x128xf32>
    %10 = vector.broadcast %4 : f32 to vector<1x128xf32>
    %11 = arith.minimumf %10, %9 : vector<1x128xf32>
    %12 = vector.broadcast %5 : f32 to vector<1x128xf32>
    %13 = arith.mulf %11, %12 : vector<1x128xf32>
    %14 = math.roundeven %13 : vector<1x128xf32>
    %15 = vector.broadcast %3 : f32 to vector<1x128xf32>
    %16 = arith.mulf %15, %14 : vector<1x128xf32>
    %17 = vector.shape_cast %16 : vector<1x128xf32> to vector<1x128xf32>
    %18 = vector.broadcast %17 : vector<1x128xf32> to vector<256x128xf32>
    %c0_2 = arith.constant 0 : index
    %c0_3 = arith.constant 0 : index
    %c0_4 = arith.constant 0 : index
    %19 = vector.load %arg6[%c0_2, %c0_3, %c0_4] : memref<1x256x128xf32, #tpu.memory_space<vmem>>, vector<1x256x128xf32>
    %20 = vector.shape_cast %19 : vector<1x256x128xf32> to vector<256x128xf32>
    %21 = vector.shape_cast %18 : vector<256x128xf32> to vector<1x256x128xf32>
    tpu.vector_store %arg6[%c0_2, %c0_3, %c0_4], %21 {strides = array<i32>} : memref<1x256x128xf32, #tpu.memory_space<vmem>>, vector<1x256x128xf32>,
    %c0_5 = arith.constant 0 : index
    %c0_6 = arith.constant 0 : index
    %c0_7 = arith.constant 0 : index
    %c0_8 = arith.constant 0 : index
    %22 = vector.load %arg3[%c0_5, %c0_6, %c0_7, %c0_8] : memref<1x18x18x4xf32, #tpu.memory_space<vmem>>, vector<1x16x16x4xf32>
    %23 = vector.shape_cast %22 : vector<1x16x16x4xf32> to vector<16x16x4xf32>
    %24 = vector.shape_cast %23 : vector<16x16x4xf32> to vector<256x4xf32>
    %c0_9 = arith.constant 0 : index
    %c0_10 = arith.constant 0 : index
    %c0_11 = arith.constant 0 : index
    %25 = vector.load %arg4[%c0_9, %c0_10, %c0_11] : memref<9x4x128xf32, #tpu.memory_space<vmem>>, vector<1x4x128xf32>
    %26 = vector.shape_cast %25 : vector<1x4x128xf32> to vector<4x128xf32>
    %cst_12 = arith.constant 0.000000e+00 : f32
    %27 = arith.subf %cst_12, %1 : f32
    %28 = vector.broadcast %27 : f32 to vector<4x128xf32>
    %29 = arith.maximumf %28, %26 : vector<4x128xf32>
    %30 = vector.broadcast %1 : f32 to vector<4x128xf32>
    %31 = arith.minimumf %30, %29 : vector<4x128xf32>
    %32 = vector.broadcast %2 : f32 to vector<4x128xf32>
    %33 = arith.mulf %31, %32 : vector<4x128xf32>
    %34 = math.roundeven %33 : vector<4x128xf32>
    %35 = vector.broadcast %0 : f32 to vector<4x128xf32>
    %36 = arith.mulf %35, %34 : vector<4x128xf32>
    %c0_13 = arith.constant 0 : index
    %c0_14 = arith.constant 0 : index
    %c0_15 = arith.constant 0 : index
    %37 = vector.load %arg6[%c0_13, %c0_14, %c0_15] : memref<1x256x128xf32, #tpu.memory_space<vmem>>, vector<1x256x128xf32>
    %38 = vector.shape_cast %37 : vector<1x256x128xf32> to vector<256x128xf32>
    %cst_16 = arith.constant dense<0.000000e+00> : vector<256x128xf32>
    %39 = tpu.matmul %24, %36, %cst_16 {dimension_numbers = #tpu.dot_dimension_numbers<[1], [0], [0], [1], [0, 0, 1, 1], [], []>} : vector<256x4xf32>, vector<4x128xf32>, vector<256x128xf32> -> vector<256x128xf32>
    %40 = arith.addf %38, %39 : vector<256x128xf32>
    %c0_17 = arith.constant 0 : index
    %c0_18 = arith.constant 0 : index
    %c0_19 = arith.constant 0 : index
    %41 = vector.load %arg6[%c0_17, %c0_18, %c0_19] : memref<1x256x128xf32, #tpu.memory_space<vmem>>, vector<1x256x128xf32>
    %42 = vector.shape_cast %41 : vector<1x256x128xf32> to vector<256x128xf32>
    %43 = vector.shape_cast %40 : vector<256x128xf32> to vector<1x256x128xf32>
    tpu.vector_store %arg6[%c0_17, %c0_18, %c0_19], %43 {strides = array<i32>} : memref<1x256x128xf32, #tpu.memory_space<vmem>>, vector<1x256x128xf32>,
    %c0_20 = arith.constant 0 : index
    %c0_21 = arith.constant 0 : index
    %c1_22 = arith.constant 1 : index
    %c0_23 = arith.constant 0 : index
    %44 = vector.load %arg3[%c0_20, %c0_21, %c1_22, %c0_23] : memref<1x18x18x4xf32, #tpu.memory_space<vmem>>, vector<1x16x16x4xf32>
    %45 = vector.shape_cast %44 : vector<1x16x16x4xf32> to vector<16x16x4xf32>
    %46 = vector.shape_cast %45 : vector<16x16x4xf32> to vector<256x4xf32>
    %c1_24 = arith.constant 1 : index
    %c0_25 = arith.constant 0 : index
    %c0_26 = arith.constant 0 : index
    %47 = vector.load %arg4[%c1_24, %c0_25, %c0_26] : memref<9x4x128xf32, #tpu.memory_space<vmem>>, vector<1x4x128xf32>
    %48 = vector.shape_cast %47 : vector<1x4x128xf32> to vector<4x128xf32>
    %cst_27 = arith.constant 0.000000e+00 : f32
    %49 = arith.subf %cst_27, %1 : f32
    %50 = vector.broadcast %49 : f32 to vector<4x128xf32>
    %51 = arith.maximumf %50, %48 : vector<4x128xf32>
    %52 = vector.broadcast %1 : f32 to vector<4x128xf32>
    %53 = arith.minimumf %52, %51 : vector<4x128xf32>
    %54 = vector.broadcast %2 : f32 to vector<4x128xf32>
    %55 = arith.mulf %53, %54 : vector<4x128xf32>
    %56 = math.roundeven %55 : vector<4x128xf32>
    %57 = vector.broadcast %0 : f32 to vector<4x128xf32>
    %58 = arith.mulf %57, %56 : vector<4x128xf32>
    %c0_28 = arith.constant 0 : index
    %c0_29 = arith.constant 0 : index
    %c0_30 = arith.constant 0 : index
    %59 = vector.load %arg6[%c0_28, %c0_29, %c0_30] : memref<1x256x128xf32, #tpu.memory_space<vmem>>, vector<1x256x128xf32>
    %60 = vector.shape_cast %59 : vector<1x256x128xf32> to vector<256x128xf32>
    %cst_31 = arith.constant dense<0.000000e+00> : vector<256x128xf32>
    %61 = tpu.matmul %46, %58, %cst_31 {dimension_numbers = #tpu.dot_dimension_numbers<[1], [0], [0], [1], [0, 0, 1, 1], [], []>} : vector<256x4xf32>, vector<4x128xf32>, vector<256x128xf32> -> vector<256x128xf32>
    %62 = arith.addf %60, %61 : vector<256x128xf32>
    %c0_32 = arith.constant 0 : index
    %c0_33 = arith.constant 0 : index
    %c0_34 = arith.constant 0 : index
    %63 = vector.load %arg6[%c0_32, %c0_33, %c0_34] : memref<1x256x128xf32, #tpu.memory_space<vmem>>, vector<1x256x128xf32>
    %64 = vector.shape_cast %63 : vector<1x256x128xf32> to vector<256x128xf32>
    %65 = vector.shape_cast %62 : vector<256x128xf32> to vector<1x256x128xf32>
    tpu.vector_store %arg6[%c0_32, %c0_33, %c0_34], %65 {strides = array<i32>} : memref<1x256x128xf32, #tpu.memory_space<vmem>>, vector<1x256x128xf32>,
    %c0_35 = arith.constant 0 : index
    %c0_36 = arith.constant 0 : index
    %c2_37 = arith.constant 2 : index
    %c0_38 = arith.constant 0 : index
    %66 = vector.load %arg3[%c0_35, %c0_36, %c2_37, %c0_38] : memref<1x18x18x4xf32, #tpu.memory_space<vmem>>, vector<1x16x16x4xf32>
    %67 = vector.shape_cast %66 : vector<1x16x16x4xf32> to vector<16x16x4xf32>
    %68 = vector.shape_cast %67 : vector<16x16x4xf32> to vector<256x4xf32>
    %c2_39 = arith.constant 2 : index
    %c0_40 = arith.constant 0 : index
    %c0_41 = arith.constant 0 : index
    %69 = vector.load %arg4[%c2_39, %c0_40, %c0_41] : memref<9x4x128xf32, #tpu.memory_space<vmem>>, vector<1x4x128xf32>
    %70 = vector.shape_cast %69 : vector<1x4x128xf32> to vector<4x128xf32>
    %cst_42 = arith.constant 0.000000e+00 : f32
    %71 = arith.subf %cst_42, %1 : f32
    %72 = vector.broadcast %71 : f32 to vector<4x128xf32>
    %73 = arith.maximumf %72, %70 : vector<4x128xf32>
    %74 = vector.broadcast %1 : f32 to vector<4x128xf32>
    %75 = arith.minimumf %74, %73 : vector<4x128xf32>
    %76 = vector.broadcast %2 : f32 to vector<4x128xf32>
    %77 = arith.mulf %75, %76 : vector<4x128xf32>
    %78 = math.roundeven %77 : vector<4x128xf32>
    %79 = vector.broadcast %0 : f32 to vector<4x128xf32>
    %80 = arith.mulf %79, %78 : vector<4x128xf32>
    %c0_43 = arith.constant 0 : index
    %c0_44 = arith.constant 0 : index
    %c0_45 = arith.constant 0 : index
    %81 = vector.load %arg6[%c0_43, %c0_44, %c0_45] : memref<1x256x128xf32, #tpu.memory_space<vmem>>, vector<1x256x128xf32>
    %82 = vector.shape_cast %81 : vector<1x256x128xf32> to vector<256x128xf32>
    %cst_46 = arith.constant dense<0.000000e+00> : vector<256x128xf32>
    %83 = tpu.matmul %68, %80, %cst_46 {dimension_numbers = #tpu.dot_dimension_numbers<[1], [0], [0], [1], [0, 0, 1, 1], [], []>} : vector<256x4xf32>, vector<4x128xf32>, vector<256x128xf32> -> vector<256x128xf32>
    %84 = arith.addf %82, %83 : vector<256x128xf32>
    %c0_47 = arith.constant 0 : index
    %c0_48 = arith.constant 0 : index
    %c0_49 = arith.constant 0 : index
    %85 = vector.load %arg6[%c0_47, %c0_48, %c0_49] : memref<1x256x128xf32, #tpu.memory_space<vmem>>, vector<1x256x128xf32>
    %86 = vector.shape_cast %85 : vector<1x256x128xf32> to vector<256x128xf32>
    %87 = vector.shape_cast %84 : vector<256x128xf32> to vector<1x256x128xf32>
    tpu.vector_store %arg6[%c0_47, %c0_48, %c0_49], %87 {strides = array<i32>} : memref<1x256x128xf32, #tpu.memory_space<vmem>>, vector<1x256x128xf32>,
    %c0_50 = arith.constant 0 : index
    %c1_51 = arith.constant 1 : index
    %c0_52 = arith.constant 0 : index
    %c0_53 = arith.constant 0 : index
    %88 = vector.load %arg3[%c0_50, %c1_51, %c0_52, %c0_53] : memref<1x18x18x4xf32, #tpu.memory_space<vmem>>, vector<1x16x16x4xf32>
    %89 = vector.shape_cast %88 : vector<1x16x16x4xf32> to vector<16x16x4xf32>
    %90 = vector.shape_cast %89 : vector<16x16x4xf32> to vector<256x4xf32>
    %c3_54 = arith.constant 3 : index
    %c0_55 = arith.constant 0 : index
    %c0_56 = arith.constant 0 : index
    %91 = vector.load %arg4[%c3_54, %c0_55, %c0_56] : memref<9x4x128xf32, #tpu.memory_space<vmem>>, vector<1x4x128xf32>
    %92 = vector.shape_cast %91 : vector<1x4x128xf32> to vector<4x128xf32>
    %cst_57 = arith.constant 0.000000e+00 : f32
    %93 = arith.subf %cst_57, %1 : f32
    %94 = vector.broadcast %93 : f32 to vector<4x128xf32>
    %95 = arith.maximumf %94, %92 : vector<4x128xf32>
    %96 = vector.broadcast %1 : f32 to vector<4x128xf32>
    %97 = arith.minimumf %96, %95 : vector<4x128xf32>
    %98 = vector.broadcast %2 : f32 to vector<4x128xf32>
    %99 = arith.mulf %97, %98 : vector<4x128xf32>
    %100 = math.roundeven %99 : vector<4x128xf32>
    %101 = vector.broadcast %0 : f32 to vector<4x128xf32>
    %102 = arith.mulf %101, %100 : vector<4x128xf32>
    %c0_58 = arith.constant 0 : index
    %c0_59 = arith.constant 0 : index
    %c0_60 = arith.constant 0 : index
    %103 = vector.load %arg6[%c0_58, %c0_59, %c0_60] : memref<1x256x128xf32, #tpu.memory_space<vmem>>, vector<1x256x128xf32>
    %104 = vector.shape_cast %103 : vector<1x256x128xf32> to vector<256x128xf32>
    %cst_61 = arith.constant dense<0.000000e+00> : vector<256x128xf32>
    %105 = tpu.matmul %90, %102, %cst_61 {dimension_numbers = #tpu.dot_dimension_numbers<[1], [0], [0], [1], [0, 0, 1, 1], [], []>} : vector<256x4xf32>, vector<4x128xf32>, vector<256x128xf32> -> vector<256x128xf32>
    %106 = arith.addf %104, %105 : vector<256x128xf32>
    %c0_62 = arith.constant 0 : index
    %c0_63 = arith.constant 0 : index
    %c0_64 = arith.constant 0 : index
    %107 = vector.load %arg6[%c0_62, %c0_63, %c0_64] : memref<1x256x128xf32, #tpu.memory_space<vmem>>, vector<1x256x128xf32>
    %108 = vector.shape_cast %107 : vector<1x256x128xf32> to vector<256x128xf32>
    %109 = vector.shape_cast %106 : vector<256x128xf32> to vector<1x256x128xf32>
    tpu.vector_store %arg6[%c0_62, %c0_63, %c0_64], %109 {strides = array<i32>} : memref<1x256x128xf32, #tpu.memory_space<vmem>>, vector<1x256x128xf32>,
    %c0_65 = arith.constant 0 : index
    %c1_66 = arith.constant 1 : index
    %c1_67 = arith.constant 1 : index
    %c0_68 = arith.constant 0 : index
    %110 = vector.load %arg3[%c0_65, %c1_66, %c1_67, %c0_68] : memref<1x18x18x4xf32, #tpu.memory_space<vmem>>, vector<1x16x16x4xf32>
    %111 = vector.shape_cast %110 : vector<1x16x16x4xf32> to vector<16x16x4xf32>
    %112 = vector.shape_cast %111 : vector<16x16x4xf32> to vector<256x4xf32>
    %c4_69 = arith.constant 4 : index
    %c0_70 = arith.constant 0 : index
    %c0_71 = arith.constant 0 : index
    %113 = vector.load %arg4[%c4_69, %c0_70, %c0_71] : memref<9x4x128xf32, #tpu.memory_space<vmem>>, vector<1x4x128xf32>
    %114 = vector.shape_cast %113 : vector<1x4x128xf32> to vector<4x128xf32>
    %cst_72 = arith.constant 0.000000e+00 : f32
    %115 = arith.subf %cst_72, %1 : f32
    %116 = vector.broadcast %115 : f32 to vector<4x128xf32>
    %117 = arith.maximumf %116, %114 : vector<4x128xf32>
    %118 = vector.broadcast %1 : f32 to vector<4x128xf32>
    %119 = arith.minimumf %118, %117 : vector<4x128xf32>
    %120 = vector.broadcast %2 : f32 to vector<4x128xf32>
    %121 = arith.mulf %119, %120 : vector<4x128xf32>
    %122 = math.roundeven %121 : vector<4x128xf32>
    %123 = vector.broadcast %0 : f32 to vector<4x128xf32>
    %124 = arith.mulf %123, %122 : vector<4x128xf32>
    %c0_73 = arith.constant 0 : index
    %c0_74 = arith.constant 0 : index
    %c0_75 = arith.constant 0 : index
    %125 = vector.load %arg6[%c0_73, %c0_74, %c0_75] : memref<1x256x128xf32, #tpu.memory_space<vmem>>, vector<1x256x128xf32>
    %126 = vector.shape_cast %125 : vector<1x256x128xf32> to vector<256x128xf32>
    %cst_76 = arith.constant dense<0.000000e+00> : vector<256x128xf32>
    %127 = tpu.matmul %112, %124, %cst_76 {dimension_numbers = #tpu.dot_dimension_numbers<[1], [0], [0], [1], [0, 0, 1, 1], [], []>} : vector<256x4xf32>, vector<4x128xf32>, vector<256x128xf32> -> vector<256x128xf32>
    %128 = arith.addf %126, %127 : vector<256x128xf32>
    %c0_77 = arith.constant 0 : index
    %c0_78 = arith.constant 0 : index
    %c0_79 = arith.constant 0 : index
    %129 = vector.load %arg6[%c0_77, %c0_78, %c0_79] : memref<1x256x128xf32, #tpu.memory_space<vmem>>, vector<1x256x128xf32>
    %130 = vector.shape_cast %129 : vector<1x256x128xf32> to vector<256x128xf32>
    %131 = vector.shape_cast %128 : vector<256x128xf32> to vector<1x256x128xf32>
    tpu.vector_store %arg6[%c0_77, %c0_78, %c0_79], %131 {strides = array<i32>} : memref<1x256x128xf32, #tpu.memory_space<vmem>>, vector<1x256x128xf32>,
    %c0_80 = arith.constant 0 : index
    %c1_81 = arith.constant 1 : index
    %c2_82 = arith.constant 2 : index
    %c0_83 = arith.constant 0 : index
    %132 = vector.load %arg3[%c0_80, %c1_81, %c2_82, %c0_83] : memref<1x18x18x4xf32, #tpu.memory_space<vmem>>, vector<1x16x16x4xf32>
    %133 = vector.shape_cast %132 : vector<1x16x16x4xf32> to vector<16x16x4xf32>
    %134 = vector.shape_cast %133 : vector<16x16x4xf32> to vector<256x4xf32>
    %c5_84 = arith.constant 5 : index
    %c0_85 = arith.constant 0 : index
    %c0_86 = arith.constant 0 : index
    %135 = vector.load %arg4[%c5_84, %c0_85, %c0_86] : memref<9x4x128xf32, #tpu.memory_space<vmem>>, vector<1x4x128xf32>
    %136 = vector.shape_cast %135 : vector<1x4x128xf32> to vector<4x128xf32>
    %cst_87 = arith.constant 0.000000e+00 : f32
    %137 = arith.subf %cst_87, %1 : f32
    %138 = vector.broadcast %137 : f32 to vector<4x128xf32>
    %139 = arith.maximumf %138, %136 : vector<4x128xf32>
    %140 = vector.broadcast %1 : f32 to vector<4x128xf32>
    %141 = arith.minimumf %140, %139 : vector<4x128xf32>
    %142 = vector.broadcast %2 : f32 to vector<4x128xf32>
    %143 = arith.mulf %141, %142 : vector<4x128xf32>
    %144 = math.roundeven %143 : vector<4x128xf32>
    %145 = vector.broadcast %0 : f32 to vector<4x128xf32>
    %146 = arith.mulf %145, %144 : vector<4x128xf32>
    %c0_88 = arith.constant 0 : index
    %c0_89 = arith.constant 0 : index
    %c0_90 = arith.constant 0 : index
    %147 = vector.load %arg6[%c0_88, %c0_89, %c0_90] : memref<1x256x128xf32, #tpu.memory_space<vmem>>, vector<1x256x128xf32>
    %148 = vector.shape_cast %147 : vector<1x256x128xf32> to vector<256x128xf32>
    %cst_91 = arith.constant dense<0.000000e+00> : vector<256x128xf32>
    %149 = tpu.matmul %134, %146, %cst_91 {dimension_numbers = #tpu.dot_dimension_numbers<[1], [0], [0], [1], [0, 0, 1, 1], [], []>} : vector<256x4xf32>, vector<4x128xf32>, vector<256x128xf32> -> vector<256x128xf32>
    %150 = arith.addf %148, %149 : vector<256x128xf32>
    %c0_92 = arith.constant 0 : index
    %c0_93 = arith.constant 0 : index
    %c0_94 = arith.constant 0 : index
    %151 = vector.load %arg6[%c0_92, %c0_93, %c0_94] : memref<1x256x128xf32, #tpu.memory_space<vmem>>, vector<1x256x128xf32>
    %152 = vector.shape_cast %151 : vector<1x256x128xf32> to vector<256x128xf32>
    %153 = vector.shape_cast %150 : vector<256x128xf32> to vector<1x256x128xf32>
    tpu.vector_store %arg6[%c0_92, %c0_93, %c0_94], %153 {strides = array<i32>} : memref<1x256x128xf32, #tpu.memory_space<vmem>>, vector<1x256x128xf32>,
    %c0_95 = arith.constant 0 : index
    %c2_96 = arith.constant 2 : index
    %c0_97 = arith.constant 0 : index
    %c0_98 = arith.constant 0 : index
    %154 = vector.load %arg3[%c0_95, %c2_96, %c0_97, %c0_98] : memref<1x18x18x4xf32, #tpu.memory_space<vmem>>, vector<1x16x16x4xf32>
    %155 = vector.shape_cast %154 : vector<1x16x16x4xf32> to vector<16x16x4xf32>
    %156 = vector.shape_cast %155 : vector<16x16x4xf32> to vector<256x4xf32>
    %c6 = arith.constant 6 : index
    %c0_99 = arith.constant 0 : index
    %c0_100 = arith.constant 0 : index
    %157 = vector.load %arg4[%c6, %c0_99, %c0_100] : memref<9x4x128xf32, #tpu.memory_space<vmem>>, vector<1x4x128xf32>
    %158 = vector.shape_cast %157 : vector<1x4x128xf32> to vector<4x128xf32>
    %cst_101 = arith.constant 0.000000e+00 : f32
    %159 = arith.subf %cst_101, %1 : f32
    %160 = vector.broadcast %159 : f32 to vector<4x128xf32>
    %161 = arith.maximumf %160, %158 : vector<4x128xf32>
    %162 = vector.broadcast %1 : f32 to vector<4x128xf32>
    %163 = arith.minimumf %162, %161 : vector<4x128xf32>
    %164 = vector.broadcast %2 : f32 to vector<4x128xf32>
    %165 = arith.mulf %163, %164 : vector<4x128xf32>
    %166 = math.roundeven %165 : vector<4x128xf32>
    %167 = vector.broadcast %0 : f32 to vector<4x128xf32>
    %168 = arith.mulf %167, %166 : vector<4x128xf32>
    %c0_102 = arith.constant 0 : index
    %c0_103 = arith.constant 0 : index
    %c0_104 = arith.constant 0 : index
    %169 = vector.load %arg6[%c0_102, %c0_103, %c0_104] : memref<1x256x128xf32, #tpu.memory_space<vmem>>, vector<1x256x128xf32>
    %170 = vector.shape_cast %169 : vector<1x256x128xf32> to vector<256x128xf32>
    %cst_105 = arith.constant dense<0.000000e+00> : vector<256x128xf32>
    %171 = tpu.matmul %156, %168, %cst_105 {dimension_numbers = #tpu.dot_dimension_numbers<[1], [0], [0], [1], [0, 0, 1, 1], [], []>} : vector<256x4xf32>, vector<4x128xf32>, vector<256x128xf32> -> vector<256x128xf32>
    %172 = arith.addf %170, %171 : vector<256x128xf32>
    %c0_106 = arith.constant 0 : index
    %c0_107 = arith.constant 0 : index
    %c0_108 = arith.constant 0 : index
    %173 = vector.load %arg6[%c0_106, %c0_107, %c0_108] : memref<1x256x128xf32, #tpu.memory_space<vmem>>, vector<1x256x128xf32>
    %174 = vector.shape_cast %173 : vector<1x256x128xf32> to vector<256x128xf32>
    %175 = vector.shape_cast %172 : vector<256x128xf32> to vector<1x256x128xf32>
    tpu.vector_store %arg6[%c0_106, %c0_107, %c0_108], %175 {strides = array<i32>} : memref<1x256x128xf32, #tpu.memory_space<vmem>>, vector<1x256x128xf32>,
    %c0_109 = arith.constant 0 : index
    %c2_110 = arith.constant 2 : index
    %c1_111 = arith.constant 1 : index
    %c0_112 = arith.constant 0 : index
    %176 = vector.load %arg3[%c0_109, %c2_110, %c1_111, %c0_112] : memref<1x18x18x4xf32, #tpu.memory_space<vmem>>, vector<1x16x16x4xf32>
    %177 = vector.shape_cast %176 : vector<1x16x16x4xf32> to vector<16x16x4xf32>
    %178 = vector.shape_cast %177 : vector<16x16x4xf32> to vector<256x4xf32>
    %c7 = arith.constant 7 : index
    %c0_113 = arith.constant 0 : index
    %c0_114 = arith.constant 0 : index
    %179 = vector.load %arg4[%c7, %c0_113, %c0_114] : memref<9x4x128xf32, #tpu.memory_space<vmem>>, vector<1x4x128xf32>
    %180 = vector.shape_cast %179 : vector<1x4x128xf32> to vector<4x128xf32>
    %cst_115 = arith.constant 0.000000e+00 : f32
    %181 = arith.subf %cst_115, %1 : f32
    %182 = vector.broadcast %181 : f32 to vector<4x128xf32>
    %183 = arith.maximumf %182, %180 : vector<4x128xf32>
    %184 = vector.broadcast %1 : f32 to vector<4x128xf32>
    %185 = arith.minimumf %184, %183 : vector<4x128xf32>
    %186 = vector.broadcast %2 : f32 to vector<4x128xf32>
    %187 = arith.mulf %185, %186 : vector<4x128xf32>
    %188 = math.roundeven %187 : vector<4x128xf32>
    %189 = vector.broadcast %0 : f32 to vector<4x128xf32>
    %190 = arith.mulf %189, %188 : vector<4x128xf32>
    %c0_116 = arith.constant 0 : index
    %c0_117 = arith.constant 0 : index
    %c0_118 = arith.constant 0 : index
    %191 = vector.load %arg6[%c0_116, %c0_117, %c0_118] : memref<1x256x128xf32, #tpu.memory_space<vmem>>, vector<1x256x128xf32>
    %192 = vector.shape_cast %191 : vector<1x256x128xf32> to vector<256x128xf32>
    %cst_119 = arith.constant dense<0.000000e+00> : vector<256x128xf32>
    %193 = tpu.matmul %178, %190, %cst_119 {dimension_numbers = #tpu.dot_dimension_numbers<[1], [0], [0], [1], [0, 0, 1, 1], [], []>} : vector<256x4xf32>, vector<4x128xf32>, vector<256x128xf32> -> vector<256x128xf32>
    %194 = arith.addf %192, %193 : vector<256x128xf32>
    %c0_120 = arith.constant 0 : index
    %c0_121 = arith.constant 0 : index
    %c0_122 = arith.constant 0 : index
    %195 = vector.load %arg6[%c0_120, %c0_121, %c0_122] : memref<1x256x128xf32, #tpu.memory_space<vmem>>, vector<1x256x128xf32>
    %196 = vector.shape_cast %195 : vector<1x256x128xf32> to vector<256x128xf32>
    %197 = vector.shape_cast %194 : vector<256x128xf32> to vector<1x256x128xf32>
    tpu.vector_store %arg6[%c0_120, %c0_121, %c0_122], %197 {strides = array<i32>} : memref<1x256x128xf32, #tpu.memory_space<vmem>>, vector<1x256x128xf32>,
    %c0_123 = arith.constant 0 : index
    %c2_124 = arith.constant 2 : index
    %c2_125 = arith.constant 2 : index
    %c0_126 = arith.constant 0 : index
    %198 = vector.load %arg3[%c0_123, %c2_124, %c2_125, %c0_126] : memref<1x18x18x4xf32, #tpu.memory_space<vmem>>, vector<1x16x16x4xf32>
    %199 = vector.shape_cast %198 : vector<1x16x16x4xf32> to vector<16x16x4xf32>
    %200 = vector.shape_cast %199 : vector<16x16x4xf32> to vector<256x4xf32>
    %c8 = arith.constant 8 : index
    %c0_127 = arith.constant 0 : index
    %c0_128 = arith.constant 0 : index
    %201 = vector.load %arg4[%c8, %c0_127, %c0_128] : memref<9x4x128xf32, #tpu.memory_space<vmem>>, vector<1x4x128xf32>
    %202 = vector.shape_cast %201 : vector<1x4x128xf32> to vector<4x128xf32>
    %cst_129 = arith.constant 0.000000e+00 : f32
    %203 = arith.subf %cst_129, %1 : f32
    %204 = vector.broadcast %203 : f32 to vector<4x128xf32>
    %205 = arith.maximumf %204, %202 : vector<4x128xf32>
    %206 = vector.broadcast %1 : f32 to vector<4x128xf32>
    %207 = arith.minimumf %206, %205 : vector<4x128xf32>
    %208 = vector.broadcast %2 : f32 to vector<4x128xf32>
    %209 = arith.mulf %207, %208 : vector<4x128xf32>
    %210 = math.roundeven %209 : vector<4x128xf32>
    %211 = vector.broadcast %0 : f32 to vector<4x128xf32>
    %212 = arith.mulf %211, %210 : vector<4x128xf32>
    %c0_130 = arith.constant 0 : index
    %c0_131 = arith.constant 0 : index
    %c0_132 = arith.constant 0 : index
    %213 = vector.load %arg6[%c0_130, %c0_131, %c0_132] : memref<1x256x128xf32, #tpu.memory_space<vmem>>, vector<1x256x128xf32>
    %214 = vector.shape_cast %213 : vector<1x256x128xf32> to vector<256x128xf32>
    %cst_133 = arith.constant dense<0.000000e+00> : vector<256x128xf32>
    %215 = tpu.matmul %200, %212, %cst_133 {dimension_numbers = #tpu.dot_dimension_numbers<[1], [0], [0], [1], [0, 0, 1, 1], [], []>} : vector<256x4xf32>, vector<4x128xf32>, vector<256x128xf32> -> vector<256x128xf32>
    %216 = arith.addf %214, %215 : vector<256x128xf32>
    %c0_134 = arith.constant 0 : index
    %c0_135 = arith.constant 0 : index
    %c0_136 = arith.constant 0 : index
    %217 = vector.load %arg6[%c0_134, %c0_135, %c0_136] : memref<1x256x128xf32, #tpu.memory_space<vmem>>, vector<1x256x128xf32>
    %218 = vector.shape_cast %217 : vector<1x256x128xf32> to vector<256x128xf32>
    %219 = vector.shape_cast %216 : vector<256x128xf32> to vector<1x256x128xf32>
    tpu.vector_store %arg6[%c0_134, %c0_135, %c0_136], %219 {strides = array<i32>} : memref<1x256x128xf32, #tpu.memory_space<vmem>>, vector<1x256x128xf32>,
    return
  }
  func.func @transform_0(%arg0: i32, %arg1: i32) -> i32 {
    %c0_i32 = arith.constant 0 : i32
    %c0_i32_0 = arith.constant 0 : i32
    return %c0_i32 : i32
  }
  func.func @transform_1(%arg0: i32, %arg1: i32) -> (i32, i32, i32, i32) {
    %c0_i32 = arith.constant 0 : i32
    %c0_i32_0 = arith.constant 0 : i32
    %c0_i32_1 = arith.constant 0 : i32
    %c0_i32_2 = arith.constant 0 : i32
    return %arg0, %c0_i32, %c0_i32_0, %c0_i32_1 : i32, i32, i32, i32
  }
  func.func @transform_2(%arg0: i32, %arg1: i32) -> (i32, i32, i32) {
    %c0_i32 = arith.constant 0 : i32
    %c0_i32_0 = arith.constant 0 : i32
    %c0_i32_1 = arith.constant 0 : i32
    return %c0_i32, %c0_i32_0, %arg1 : i32, i32, i32
  }
  func.func @transform_3(%arg0: i32, %arg1: i32) -> (i32, i32) {
    %c0_i32 = arith.constant 0 : i32
    %c0_i32_0 = arith.constant 0 : i32
    return %c0_i32, %arg1 : i32, i32
  }
  func.func @transform_4(%arg0: i32, %arg1: i32) -> (i32, i32, i32) {
    %c0_i32 = arith.constant 0 : i32
    %c0_i32_0 = arith.constant 0 : i32
    return %arg0, %c0_i32, %arg1 : i32, i32, i32
  }
}

</mosaic_0001>

<bundles_post_ra>
// kernel: mpq_conv2d.1
= control target key start
LH: loop header
LB: loop body
LE: loop exit
PB: predicated region body
PF: predicated region fallthrough
CT: control target
= control target key end

     0   :  { %9 = vsyncpa [#allocation3], 0  ;;  %s6371_s15 = smov 0   ;;  %s6373_s16 = smov 0   ;;  %s7491_s0 = inlined_call_operand.vmem [shape: f32[6], index: 0, kind: input, shape index: {}]   ;;  %s7492_s1 = inlined_call_operand.vmem [shape: f32[2,18,18,4], index: 1, kind: input, shape index: {}]   ;;  %s7493_s2 = inlined_call_operand.vmem [shape: f32[9,4,128], index: 2, kind: input, shape index: {}]   ;;  %s7494_s3 = inlined_call_operand.vmem [shape: f32[1,128], index: 3, kind: input, shape index: {}]   ;;  %s7495_s4 = inlined_call_operand.vmem [shape: f32[2,256,128], index: 4, kind: output, shape index: {}]  }
   0x1   :  { %s6375_s17 = smov 0  }
   0x2 LB: > { %s4574_s18 = sadd.s32 4294967295, %s6343_s17   ;;  %s27_s19 = sadd.s32 1, %s6339_s16  ;;  %s6343_s17 = sphi %s6375_s17, %s15_s17   ;;  %s6339_s16 = sphi %s6373_s16, %s7625_s16   ;;  %s6335_s15 = sphi %s6371_s15, %s7624_s15  }
   0x3   : > { %p29_p0 = scmp.ge.s32.totalorder %s27_s19, 2  ;;  %p4576_p1 = scmp.ge.s32.totalorder %s6343_s17, 1 }
   0x4   : > { %p159_p2 = scmp.lt.s32.totalorder %s6343_s17, 3  ;;  %p6396_p4 = scmp.eq.s32.totalorder %s4574_s18, 0 }
   0x5   : > { %s7627_s19 = smov (%p29_p0, %s27_s19), 0  ;;  %s172_s24 = sshll.u32 %s7491_s0, 4  ;;  %s173_s24 = int_to_ptr.vmem [resolvable:$true] %s172_s24 }
   0x6   : > { %p6392_p3 = pnand %p4576_p1, %p159_p2  ;;  %s6302_s25 = scalar_lea.vmem %s173_s24, 16 }
   0x7   : > { %p6303_p7 = scmp.ne.s32.totalorder %s173_s24, %s6302_s25  ;;  %p6310_p11 = scmp.lt.s32.totalorder %s173_s24, %s173_s24 }
   0x8   : > { %p6271_p5 = pneg %p6392_p3  ;;  %p6311_p12 = scmp.lt.s32.totalorder %s6302_s25, %s6302_s25 }
   0xa   : > { %p6272_p6 = pnand %p6396_p4, %p6271_p5  ;;  %p6312_p13 = por %p6311_p12, %p6310_p11 }
   0xc   : > { %p6304_p8 = pneg %p6272_p6 }
   0xe   : > { %p6305_p9 = pnand %p6304_p8, %p6303_p7 }
  0x10   : > { %p6306_p10 = pneg %p6305_p9 }
  0x12   : > { %p6313_p0 = pnand %p6312_p13, %p6306_p10 }
  0x14   : > { %6316 = shalt.err (!%p6313_p0)
}
  0x15   : > { %s6345_s26 = smov [#allocation2]   ;;  %206 = sbr.rel (%p6392_p3) target bundleno = 554 (0x22a), region = 36 }
  0x16   : > { %6274 = dma.vmem_to_smem (!%p6272_p6), %s173_s24, 16, %s6345_s26, [#allocation3]  }
  0x1c   : > { %6330 = dma.done.wait (%p6396_p4), [#allocation3], 16  }
  0x1d   : > { %6332 = vsyncadd (%p6396_p4), [#allocation3], 4294967280 }
  0x1e   : > { %212 = sfence }
  0x1f   : > { %s4586_s27 = sld [smem:[#allocation2 + $0x1]]  ;;  %p243_p1 = scmp.lt.s32.totalorder %s6335_s15, 1  ;;  %v350_v0 = vld [vmem:[%s7493_s2] sm:$0xf]  ;;  %v4790_v1 = vld [vmem:[%s7493_s2 + $0x10] sm:$0xf] }
  0x20   : > { %s4587_s28 = sld [smem:[#allocation2 + $0x2]]  ;;  %s6417_s29 = sld [smem:[#allocation2]]  ;;  %vm393_vm0 = vcmask 31744   ;;  %v4624_v2 = vld [vmem:[%s7493_s2 + $0x4] sm:$0xf]  ;;  %vm490_vm1 = vcmask 1043456  }
  0x21   : > { %s7629_s15 = smov (!%p243_p1, %s6335_s15), 1  ;;  %v4856_v3 = vld [vmem:[%s7493_s2 + $0x14] sm:$0xf]  ;;  %v4922_v4 = vld [vmem:[%s7493_s2 + $0x18] sm:$0xf]  ;;  %s4589_s5 = sld [smem:[#allocation2 + $0x4]] }
  0x22   : > { %s6256_s6 = smul.u32 432, %s7629_s15  ;;  %v4658_v5 = vld [vmem:[%s7493_s2 + $0x8] sm:$0xf]  ;;  %v4988_v58 = vld [vmem:[%s7493_s2 + $0x1c] sm:$0xf]  ;;  %s4588_s10 = sld [smem:[#allocation2 + $0x3]] }
  0x23   : > { %s5090_s11 = sshll.u32 %s7629_s15, 8 }
  0x24   : > { %s6432_s14 = scalar_lea.vmem %s7492_s1, %s6256_s6 }
  0x25   : > { %s351_s7 = ssub.f32 0.0, %s4586_s27  ;;  %v6445_v7 = vstv %s4586_s27  ;;  %v318_v8 = vld [vmem:[%s6432_s14] sm:$0xff]  ;;  %v319_v38 = vld [vmem:[%s6432_s14 + $0x8] sm:$0xff]  ;;  %v6493_v41 = vld [vmem:[%s6432_s14 + $0x18] sm:$0xff] }
  0x26   : > { %v6449_v9 = vld [vmem:[%s6432_s14 + $0x19] sm:$0xff]  ;;  %5390 = vmatprep.mubr.msk.f32.mxu1 %vm393_vm0, %v318_v8  ;;  %v6457_v13 = vstv %s4587_s28  ;;  %v6472_v26 = vstv %s6417_s29  ;;  %v6487_v39 = vld [vmem:[%s6432_s14 + $0x21] sm:$0xff]  ;;  %7550 = vst [vmem:[#allocation5_spill] sm:$0xff] %v6493_v41 }
  0x27   : > { %v6443_v6 = vstv %s351_s7  ;;  %5590 = vmatprep.mubr.msk.f32.mxu0 %vm393_vm0, %v6449_v9  ;;  %v6496_v42 = vld [vmem:[%s6432_s14 + $0x31] sm:$0xff]  ;;  %v6508_v45 = vld [vmem:[%s6432_s14 + $0x20] sm:$0xff]  ;;  %v6524_v49 = vld [vmem:[%s6432_s14 + $0x49] sm:$0xff]  ;;  %s270_s6 = ssub.f32 0.0, %s4589_s5  ;;  %s4590_s7 = sld [smem:[#allocation2 + $0x5]] }
  0x28   : > { %v353_v10 = vmax.f32 %v6443_v6, %v350_v0  ;;  %v2195_v11 = vmax.f32 %v6443_v6, %v4790_v1  ;;  %v817_v12 = vmax.f32 %v6443_v6, %v4624_v2  ;;  %v2654_v14 = vmax.f32 %v6443_v6, %v4856_v3  ;;  %7551 = vst [vmem:[#allocation6_spill] sm:$0xff] %v6508_v45  ;;  %v6515_v46 = vld [vmem:[%s6432_s14 + $0x39] sm:$0xff]  ;;  %v6518_v47 = vld [vmem:[%s6432_s14 + $0x30] sm:$0xff]  ;;  %v6545_v52 = vld [vmem:[%s6432_s14 + $0x48] sm:$0xff] }
  0x29   : > { %v3114_v15 = vmax.f32 %v6443_v6, %v4922_v4  ;;  %v1276_v16 = vmax.f32 %v6443_v6, %v4658_v5  ;;  %v6537_v50 = vld [vmem:[%s6432_s14 + $0x38] sm:$0xff]  ;;  %7553 = vst [vmem:[#allocation8_spill] sm:$0xff] %v6545_v52  ;;  %v6550_v53 = vld [vmem:[%s6432_s14 + $0x61] sm:$0xff]  ;;  %v6559_v54 = vld [vmem:[%s6432_s14 + $0x50] sm:$0xff]  ;;  %v3573_v63 = vmax.f32 %v6443_v6, %v4988_v58 }
  0x2a   : > { %v355_v17 = vmin.f32 %v6445_v7, %v353_v10  ;;  %v2196_v18 = vmin.f32 %v6445_v7, %v2195_v11  ;;  %v818_v19 = vmin.f32 %v6445_v7, %v817_v12  ;;  %v2655_v20 = vmin.f32 %v6445_v7, %v2654_v14  ;;  %7552 = vst [vmem:[#allocation7_spill] sm:$0xff] %v6537_v50  ;;  %v6542_v51 = vld [vmem:[%s6432_s14 + $0x51] sm:$0xff]  ;;  %v6564_v55 = vld [vmem:[%s6432_s14 + $0x69] sm:$0xff]  ;;  %v6567_v56 = vld [vmem:[%s6432_s14 + $0x60] sm:$0xff] }
  0x2b   : > { %v3115_v21 = vmin.f32 %v6445_v7, %v3114_v15  ;;  %v1277_v22 = vmin.f32 %v6445_v7, %v1276_v16  ;;  %7554 = vst [vmem:[#allocation9_spill] sm:$0xff] %v6559_v54  ;;  %7555 = vst [vmem:[#allocation10_spill] sm:$0xff] %v6567_v56  ;;  %v6570_v57 = vld [vmem:[%s6432_s14 + $0x79] sm:$0xff]  ;;  %v6582_v59 = vld [vmem:[%s6432_s14 + $0x68] sm:$0xff]  ;;  %v3574_v4 = vmin.f32 %v6445_v7, %v3573_v63 }
  0x2c   : > { %v357_v23 = vmul.f32 %v6457_v13, %v355_v17  ;;  %v2197_v24 = vmul.f32 %v2196_v18, %v6457_v13  ;;  %v819_v25 = vmul.f32 %v818_v19, %v6457_v13  ;;  %v2656_v27 = vmul.f32 %v2655_v20, %v6457_v13  ;;  %7556 = vst [vmem:[#allocation11_spill] sm:$0xff] %v6582_v59  ;;  %v6587_v60 = vld [vmem:[%s6432_s14 + $0x81] sm:$0xff]  ;;  %v6590_v61 = vld [vmem:[%s6432_s14 + $0x78] sm:$0xff]  ;;  %v6611_v2 = vld [vmem:[%s6432_s14 + $0x90] sm:$0xff] }
  0x2d   : > { %v1278_v28 = vmul.f32 %v1277_v22, %v6457_v13  ;;  %v3116_v32 = vmul.f32 %v3115_v21, %v6457_v13  ;;  %7557 = vst [vmem:[#allocation12_spill] sm:$0xff] %v6590_v61  ;;  %v6593_v62 = vld [vmem:[%s6432_s14 + $0x91] sm:$0xff]  ;;  %v6603_v0 = vld [vmem:[%s6432_s14 + $0x80] sm:$0xff]  ;;  %7559 = vst [vmem:[#allocation14_spill] sm:$0xff] %v6611_v2  ;;  %v3575_v16 = vmul.f32 %v3574_v4, %v6457_v13 }
  0x2e   : > { %v6258_v29 = vround.rtne.f32 %v357_v23  ;;  %v6262_v30 = vround.rtne.f32 %v2197_v24  ;;  %v6259_v31 = vround.rtne.f32 %v819_v25  ;;  %v6263_v33 = vround.rtne.f32 %v2656_v27  ;;  %7558 = vst [vmem:[#allocation13_spill] sm:$0xff] %v6603_v0  ;;  %v6608_v1 = vld [vmem:[%s6432_s14 + $0x99] sm:$0xff]  ;;  %v6614_v3 = vld [vmem:[%s6432_s14 + $0xa9] sm:$0xff]  ;;  %v6633_v11 = vld [vmem:[%s6432_s14 + $0xb1] sm:$0xff] }
  0x2f   : > { %v6260_v34 = vround.rtne.f32 %v1278_v28  ;;  %v6264_v40 = vround.rtne.f32 %v3116_v32  ;;  %v4724_v5 = vld [vmem:[%s7493_s2 + $0xc] sm:$0xf]  ;;  %v6628_v10 = vld [vmem:[%s6432_s14 + $0x98] sm:$0xff]  ;;  %v6640_v15 = vld [vmem:[%s6432_s14 + $0xc1] sm:$0xff]  ;;  %v6265_v23 = vround.rtne.f32 %v3575_v16 }
  0x30   : > { %v360_v35 = vmul.f32 %v6258_v29, %v6472_v26  ;;  %v6479_v36 = vmul.f32 %v6262_v30, %v6472_v26  ;;  %v821_v37 = vmul.f32 %v6259_v31, %v6472_v26  ;;  %v2658_v43 = vmul.f32 %v6263_v33, %v6472_v26  ;;  %7560 = vst [vmem:[#allocation15_spill] sm:$0xff] %v6628_v10  ;;  %v6636_v12 = vld [vmem:[%s6432_s14 + $0xa8] sm:$0xff]  ;;  %v6651_v18 = vld [vmem:[%s6432_s14 + $0xb0] sm:$0xff]  ;;  %v6659_v20 = vld [vmem:[%s6432_s14 + $0xc0] sm:$0xff] }
  0x31   : > { %v6500_v44 = vmul.f32 %v6260_v34, %v6472_v26  ;;  %v6521_v48 = vmul.f32 %v6264_v40, %v6472_v26  ;;  %v1736_v8 = vmax.f32 %v6443_v6, %v4724_v5  ;;  %7561 = vst [vmem:[#allocation16_spill] sm:$0xff] %v6636_v12  ;;  %7562 = vst [vmem:[#allocation17_spill] sm:$0xff] %v6651_v18  ;;  %v6656_v19 = vld [vmem:[%s6432_s14 + $0xc9] sm:$0xff]  ;;  %v6662_v22 = vld [vmem:[%s6432_s14 + $0x1a] sm:$0xff] }
  0x32   : > { %5388 = vmatprep.subr.msk.mxu1 %vm490_vm1, %v360_v35  ;;  %5588 = vmatprep.subr.msk.mxu0 %vm490_vm1, %v6479_v36  ;;  %7563 = vst [vmem:[#allocation18_spill] sm:$0xff] %v6659_v20  ;;  %v6674_v25 = vld [vmem:[%s6432_s14 + $0xc8] sm:$0xff]  ;;  %v6682_v28 = vld [vmem:[%s6432_s14 + $0xd8] sm:$0xff]  ;;  %v6688_v30 = vmul.f32 %v6265_v23, %v6472_v26  ;;  %v6697_v31 = vld [vmem:[%s6432_s14 + $0xe0] sm:$0xff] }
  0x33   : > { %5389 = vmatpush3.msk.msra.mxu1 %vm490_vm1, %v360_v35  ;;  %5589 = vmatpush3.msk.msra.mxu0 %vm490_vm1, %v6479_v36  ;;  %v1737_v14 = vmin.f32 %v6445_v7, %v1736_v8  ;;  %v6679_v27 = vld [vmem:[%s6432_s14 + $0x22] sm:$0xff]  ;;  %v6685_v29 = vld [vmem:[%s6432_s14 + $0x32] sm:$0xff]  ;;  %v6702_v32 = vld [vmem:[%s6432_s14 + $0x3a] sm:$0xff] }
  0x34   : > { %5391 = vmatmul.mubr.msk.f32.vlgmr.msra.gmra.mrb[0].mxu1 %vm393_vm0, %v319_v38  ;;  %5438 = vmatprep.subr.msk.mxu1 %vm490_vm1, %v821_v37  ;;  %v6705_v33 = vld [vmem:[%s6432_s14 + $0xf0] sm:$0xff]  ;;  %v6721_v35 = vld [vmem:[%s6432_s14 + $0xf8] sm:$0xff]  ;;  %v6729_v38 = vld [vmem:[%s6432_s14 + $0x108] sm:$0xff] }
  0x35   : > { %5591 = vmatmul.mubr.msk.f32.vlgmr.msra.gmra.mrb[0].mxu0 %vm393_vm0, %v6487_v39  ;;  %5439 = vmatpush3.msk.msra.mxu1 %vm490_vm1, %v821_v37  ;;  %v1738_v17 = vmul.f32 %v1737_v14, %v6457_v13  ;;  %v6710_v34 = vld [vmem:[%s6432_s14 + $0x4a] sm:$0xff]  ;;  %v6726_v37 = vld [vmem:[%s6432_s14 + $0x52] sm:$0xff]  ;;  %v6732_v40 = vld [vmem:[%s6432_s14 + $0x62] sm:$0xff] }
  0x36   : > { %5393 = vmatprep.mubr.msk.f32.mxu1 %vm393_vm0, %v6493_v41  ;;  %5593 = vmatprep.mubr.msk.f32.mxu0 %vm393_vm0, %v6496_v42  ;;  %v6749_v58 = vld [vmem:[%s6432_s14 + $0x6a] sm:$0xff]  ;;  %v6752_v63 = vld [vmem:[%s6432_s14 + $0x120] sm:$0xff]  ;;  %v6774_v16 = vld [vmem:[%s6432_s14 + $0x138] sm:$0xff] }
  0x37   : > { %5638 = vmatprep.subr.msk.mxu0 %vm490_vm1, %v2658_v43  ;;  %5488 = vmatprep.subr.msk.mxu1 %vm490_vm1, %v6500_v44  ;;  %v6261_v21 = vround.rtne.f32 %v1738_v17  ;;  %v6756_v5 = vld [vmem:[%s6432_s14 + $0x7a] sm:$0xff]  ;;  %v6766_v14 = vld [vmem:[%s6432_s14 + $0x128] sm:$0xff]  ;;  %v6778_v17 = vld [vmem:[%s6432_s14 + $0x92] sm:$0xff] }
  0x38   : > { %5394 = vmatmul.mubr.msk.f32.gmra.mrb[2].mxu1 %vm393_vm0, %v6508_v45  ;;  %5639 = vmatpush3.msk.msra.mxu0 %vm490_vm1, %v2658_v43  ;;  %v6741_v43 = vld [vmem:[%s6432_s14 + $0x110] sm:$0xff]  ;;  %7565 = vst [vmem:[#allocation20_spill] sm:$0xff] %v6778_v17  ;;  %v6787_v23 = vld [vmem:[%s6432_s14 + $0x140] sm:$0xff] }
  0x39   : > { %5594 = vmatmul.mubr.msk.f32.gmra.mrb[2].mxu0 %vm393_vm0, %v6515_v46  ;;  %5396 = vmatprep.mubr.msk.f32.mxu1 %vm393_vm0, %v6518_v47  ;;  %v6667_v24 = vmul.f32 %v6261_v21, %v6472_v26  ;;  %v6821_v45 = vld [vmem:[%s6432_s14 + $0xc2] sm:$0xff]  ;;  %v6830_v41 = vld [vmem:[%s6432_s14 + $0x170] sm:$0xff] }
  0x3a   : > { %5596 = vmatprep.mubr.msk.f32.mxu0 %vm393_vm0, %v6524_v49  ;;  %5688 = vmatprep.subr.msk.mxu0 %vm490_vm1, %v6521_v48  ;;  %7572 = vst [vmem:[#allocation27_spill] sm:$0xff] %v6821_v45  ;;  %7573 = vst [vmem:[#allocation28_spill] sm:$0xff] %v6830_v41 }
  0x3c   : > { %5397 = vmatmul.mubr.msk.f32.gmra.mrb[4].mxu1 %vm393_vm0, %v6537_v50 }
  0x3d   : > { %5597 = vmatmul.mubr.msk.f32.gmra.mrb[4].mxu0 %vm393_vm0, %v6542_v51  ;;  %5399 = vmatprep.mubr.msk.f32.mxu1 %vm393_vm0, %v6545_v52 }
  0x3e   : > { %5599 = vmatprep.mubr.msk.f32.mxu0 %vm393_vm0, %v6550_v53 }
  0x40   : > { %5400 = vmatmul.mubr.msk.f32.gmra.mrb[6].mxu1 %vm393_vm0, %v6559_v54 }
  0x41   : > { %5600 = vmatmul.mubr.msk.f32.gmra.mrb[6].mxu0 %vm393_vm0, %v6564_v55  ;;  %5402 = vmatprep.mubr.msk.f32.mxu1 %vm393_vm0, %v6567_v56 }
  0x42   : > { %5602 = vmatprep.mubr.msk.f32.mxu0 %vm393_vm0, %v6570_v57 }
  0x44   : > { %5403 = vmatmul.mubr.msk.f32.gmra.mrb[8].mxu1 %vm393_vm0, %v6582_v59 }
  0x45   : > { %5603 = vmatmul.mubr.msk.f32.gmra.mrb[8].mxu0 %vm393_vm0, %v6587_v60  ;;  %5405 = vmatprep.mubr.msk.f32.mxu1 %vm393_vm0, %v6590_v61 }
  0x46   : > { %5605 = vmatprep.mubr.msk.f32.mxu0 %vm393_vm0, %v6593_v62 }
  0x48   : > { %5406 = vmatmul.mubr.msk.f32.gmra.mrb[10].mxu1 %vm393_vm0, %v6603_v0 }
  0x49   : > { %5606 = vmatmul.mubr.msk.f32.gmra.mrb[10].mxu0 %vm393_vm0, %v6608_v1  ;;  %5408 = vmatprep.mubr.msk.f32.mxu1 %vm393_vm0, %v6611_v2 }
  0x4a   : > { %5608 = vmatprep.mubr.msk.f32.mxu0 %vm393_vm0, %v6614_v3 }
  0x4c   : > { %5409 = vmatmul.mubr.msk.f32.gmra.mrb[12].mxu1 %vm393_vm0, %v6628_v10 }
  0x4d   : > { %5609 = vmatmul.mubr.msk.f32.gmra.mrb[12].mxu0 %vm393_vm0, %v6633_v11  ;;  %5411 = vmatprep.mubr.msk.f32.mxu1 %vm393_vm0, %v6636_v12 }
  0x4e   : > { %5611 = vmatprep.mubr.msk.f32.mxu0 %vm393_vm0, %v6640_v15 }
  0x50   : > { %5412 = vmatmul.mubr.msk.f32.gmra.mrb[14].mxu1 %vm393_vm0, %v6651_v18 }
  0x51   : > { %5612 = vmatmul.mubr.msk.f32.gmra.mrb[14].mxu0 %vm393_vm0, %v6656_v19  ;;  %5414 = vmatprep.mubr.msk.f32.mxu1 %vm393_vm0, %v6659_v20 }
  0x52   : > { %5640 = vmatprep.mubr.msk.f32.mxu0 %vm393_vm0, %v6662_v22 }
  0x54   : > { %5415 = vmatmul.mubr.msk.f32.gmra.mrb[16].mxu1 %vm393_vm0, %v6674_v25 }
  0x55   : > { %5641 = vmatmul.mubr.msk.f32.vlgmr.msra.gmra.mrb[0].mxu0 %vm393_vm0, %v6679_v27  ;;  %5417 = vmatprep.mubr.msk.f32.mxu1 %vm393_vm0, %v6682_v28 }
  0x56   : > { %5643 = vmatprep.mubr.msk.f32.mxu0 %vm393_vm0, %v6685_v29  ;;  %5689 = vmatpush3.msk.msra.mxu0 %vm490_vm1, %v6521_v48  ;;  %v5054_v48 = vld [vmem:[%s7493_s2 + $0x20] sm:$0xf] }
  0x57   : > { %5738 = vmatprep.subr.msk.mxu0 %vm490_vm1, %v6688_v30  ;;  %v4032_v4 = vmax.f32 %v6443_v6, %v5054_v48  ;;  %v6771_v6 = vld [vmem:[%s6432_s14 + $0x82] sm:$0xff]  ;;  %v6795_v48 = vld [vmem:[%s6432_s14 + $0x150] sm:$0xff] }
  0x58   : > { %5418 = vmatmul.mubr.msk.f32.gmra.mrb[18].mxu1 %vm393_vm0, %v6697_v31  ;;  %7564 = vst [vmem:[#allocation19_spill] sm:$0xff] %v6771_v6  ;;  %7567 = vst [vmem:[#allocation22_spill] sm:$0xff] %v6795_v48 }
  0x59   : > { %5644 = vmatmul.mubr.msk.f32.gmra.mrb[2].mxu0 %vm393_vm0, %v6702_v32  ;;  %5420 = vmatprep.mubr.msk.f32.mxu1 %vm393_vm0, %v6705_v33  ;;  %v4033_v8 = vmin.f32 %v6445_v7, %v4032_v4 }
  0x5a   : > { %5646 = vmatprep.mubr.msk.f32.mxu0 %vm393_vm0, %v6710_v34 }
  0x5b   : > { %v4034_v7 = vmul.f32 %v4033_v8, %v6457_v13  ;;  %v6792_v13 = vld [vmem:[%s6432_s14 + $0x9a] sm:$0xff]  ;;  %v6801_v8 = vld [vmem:[%s6432_s14 + $0xaa] sm:$0xff] }
  0x5c   : > { %5421 = vmatmul.mubr.msk.f32.gmra.mrb[20].mxu1 %vm393_vm0, %v6721_v35  ;;  %7566 = vst [vmem:[#allocation21_spill] sm:$0xff] %v6792_v13  ;;  %7568 = vst [vmem:[#allocation23_spill] sm:$0xff] %v6801_v8 }
  0x5d   : > { %5647 = vmatmul.mubr.msk.f32.gmra.mrb[4].mxu0 %vm393_vm0, %v6726_v37  ;;  %5423 = vmatprep.mubr.msk.f32.mxu1 %vm393_vm0, %v6729_v38  ;;  %v6266_v21 = vround.rtne.f32 %v4034_v7  ;;  %v6810_v7 = vld [vmem:[%s6432_s14 + $0x158] sm:$0xff] }
  0x5e   : > { %5649 = vmatprep.mubr.msk.f32.mxu0 %vm393_vm0, %v6732_v40  ;;  %7569 = vst [vmem:[#allocation24_spill] sm:$0xff] %v6810_v7 }
  0x5f   : > { %v6798_v4 = vmul.f32 %v6266_v21, %v6472_v26  ;;  %v6815_v26 = vld [vmem:[%s6432_s14 + $0xb2] sm:$0xff]  ;;  %v6818_v21 = vld [vmem:[%s6432_s14 + $0x168] sm:$0xff] }
  0x60   : > { %5424 = vmatmul.mubr.msk.f32.gmra.mrb[22].mxu1 %vm393_vm0, %v6741_v43  ;;  %7570 = vst [vmem:[#allocation25_spill] sm:$0xff] %v6815_v26  ;;  %7571 = vst [vmem:[#allocation26_spill] sm:$0xff] %v6818_v21 }
  0x61   : > { %5650 = vmatmul.mubr.msk.f32.gmra.mrb[6].mxu0 %vm393_vm0, %v6749_v58  ;;  %5426 = vmatprep.mubr.msk.f32.mxu1 %vm393_vm0, %v6752_v63 }
  0x62   : > { %5652 = vmatprep.mubr.msk.f32.mxu0 %vm393_vm0, %v6756_v5 }
  0x64   : > { %5427 = vmatmul.mubr.msk.f32.gmra.mrb[24].mxu1 %vm393_vm0, %v6766_v14 }
  0x65   : > { %5653 = vmatmul.mubr.msk.f32.gmra.mrb[8].mxu0 %vm393_vm0, %v6771_v6  ;;  %5429 = vmatprep.mubr.msk.f32.mxu1 %vm393_vm0, %v6774_v16  ;;  %v6853_v6 = vld [vmem:[%s6432_s14 + $0xf2] sm:$0xff] }
  0x66   : > { %5655 = vmatprep.mubr.msk.f32.mxu0 %vm393_vm0, %v6778_v17  ;;  %v6839_v17 = vld [vmem:[%s6432_s14 + $0xda] sm:$0xff] }
  0x67   : > { %7574 = vst [vmem:[#allocation29_spill] sm:$0xff] %v6839_v17 }
  0x68   : > { %5430 = vmatmul.mubr.msk.f32.gmra.mrb[26].mxu1 %vm393_vm0, %v6787_v23 }
  0x69   : > { %5656 = vmatmul.mubr.msk.f32.gmra.mrb[10].mxu0 %vm393_vm0, %v6792_v13  ;;  %5432 = vmatprep.mubr.msk.f32.mxu1 %vm393_vm0, %v6795_v48  ;;  %v783_v13 = vld [vmem:[%s6432_s14 + $0x1] sm:$0xff] }
  0x6a   : > { %5658 = vmatprep.mubr.msk.f32.mxu0 %vm393_vm0, %v6801_v8  ;;  %v6835_v8 = vld [vmem:[%s6432_s14 + $0xca] sm:$0xff] }
  0x6c   : > { %5433 = vmatmul.mubr.msk.f32.gmra.mrb[28].mxu1 %vm393_vm0, %v6810_v7 }
  0x6d   : > { %5659 = vmatmul.mubr.msk.f32.gmra.mrb[12].mxu0 %vm393_vm0, %v6815_v26  ;;  %5435 = vmatprep.mubr.msk.f32.mxu1 %vm393_vm0, %v6818_v21  ;;  %v784_v26 = vld [vmem:[%s6432_s14 + $0x9] sm:$0xff] }
  0x6e   : > { %5661 = vmatprep.mubr.msk.f32.mxu0 %vm393_vm0, %v6821_v45  ;;  %v6850_v45 = vld [vmem:[%s6432_s14 + $0xe2] sm:$0xff] }
  0x70   : > { %5436 = vmatmul.mubr.msk.f32.gmra.mrb[30].mxu1 %vm393_vm0, %v6830_v41 }
  0x71   : > { %5662 = vmatmul.mubr.msk.f32.gmra.mrb[14].mxu0 %vm393_vm0, %v6835_v8  ;;  %5440 = vmatprep.mubr.msk.f32.mxu1 %vm393_vm0, %v783_v13  ;;  %v6865_v13 = vld [vmem:[%s6432_s14 + $0xfa] sm:$0xff] }
  0x72   : > { %5664 = vmatprep.mubr.msk.f32.mxu0 %vm393_vm0, %v6839_v17  ;;  %v6868_v17 = vld [vmem:[%s6432_s14 + $0x10a] sm:$0xff] }
  0x74   : > { %5441 = vmatmul.mubr.msk.f32.vlgmr.msra.gmra.mrb[0].mxu1 %vm393_vm0, %v784_v26  ;;  %v6898_v26 = vld [vmem:[%s6432_s14 + $0x13a] sm:$0xff] }
  0x75   : > { %5665 = vmatmul.mubr.msk.f32.gmra.mrb[16].mxu0 %vm393_vm0, %v6850_v45  ;;  %5489 = vmatpush3.msk.msra.mxu1 %vm490_vm1, %v6500_v44  ;;  %v6884_v44 = vld [vmem:[%s6432_s14 + $0x122] sm:$0xff]  ;;  %7578 = vst [vmem:[#allocation33_spill] sm:$0xff] %v6898_v26 }
  0x76   : > { %5443 = vmatprep.mubr.msk.f32.mxu1 %vm393_vm0, %v6449_v9  ;;  %5667 = vmatprep.mubr.msk.f32.mxu0 %vm393_vm0, %v6853_v6  ;;  %v6881_v9 = vld [vmem:[%s6432_s14 + $0x112] sm:$0xff]  ;;  %7576 = vst [vmem:[#allocation31_spill] sm:$0xff] %v6884_v44 }
  0x77   : > { %5538 = vmatprep.subr.msk.mxu1 %vm490_vm1, %v6667_v24  ;;  %7575 = vst [vmem:[#allocation30_spill] sm:$0xff] %v6881_v9 }
  0x78   : > { %5444 = vmatmul.mubr.msk.f32.gmra.mrb[2].mxu1 %vm393_vm0, %v6487_v39  ;;  %v6895_v39 = vld [vmem:[%s6432_s14 + $0x12a] sm:$0xff] }
  0x79   : > { %5668 = vmatmul.mubr.msk.f32.gmra.mrb[18].mxu0 %vm393_vm0, %v6865_v13  ;;  %5446 = vmatprep.mubr.msk.f32.mxu1 %vm393_vm0, %v6496_v42  ;;  %7577 = vst [vmem:[#allocation32_spill] sm:$0xff] %v6895_v39 }
  0x7a   : > { %5670 = vmatprep.mubr.msk.f32.mxu0 %vm393_vm0, %v6868_v17 }
  0x7c   : > { %5447 = vmatmul.mubr.msk.f32.gmra.mrb[4].mxu1 %vm393_vm0, %v6515_v46 }
  0x7d   : > { %5671 = vmatmul.mubr.msk.f32.gmra.mrb[20].mxu0 %vm393_vm0, %v6881_v9  ;;  %5449 = vmatprep.mubr.msk.f32.mxu1 %vm393_vm0, %v6524_v49  ;;  %v6909_v9 = vld [vmem:[%s6432_s14 + $0x142] sm:$0xff] }
  0x7e   : > { %5673 = vmatprep.mubr.msk.f32.mxu0 %vm393_vm0, %v6884_v44  ;;  %7579 = vst [vmem:[#allocation34_spill] sm:$0xff] %v6909_v9  ;;  %v6912_v44 = vld [vmem:[%s6432_s14 + $0x152] sm:$0xff] }
  0x7f   : > { %7580 = vst [vmem:[#allocation35_spill] sm:$0xff] %v6912_v44 }
  0x80   : > { %5450 = vmatmul.mubr.msk.f32.gmra.mrb[6].mxu1 %vm393_vm0, %v6542_v51 }
  0x81   : > { %5674 = vmatmul.mubr.msk.f32.gmra.mrb[22].mxu0 %vm393_vm0, %v6895_v39  ;;  %5452 = vmatprep.mubr.msk.f32.mxu1 %vm393_vm0, %v6550_v53  ;;  %v6923_v39 = vld [vmem:[%s6432_s14 + $0x15a] sm:$0xff] }
  0x82   : > { %5676 = vmatprep.mubr.msk.f32.mxu0 %vm393_vm0, %v6898_v26  ;;  %7581 = vst [vmem:[#allocation36_spill] sm:$0xff] %v6923_v39  ;;  %v6926_v26 = vld [vmem:[%s6432_s14 + $0x16a] sm:$0xff] }
  0x84   : > { %5453 = vmatmul.mubr.msk.f32.gmra.mrb[8].mxu1 %vm393_vm0, %v6564_v55 }
  0x85   : > { %5677 = vmatmul.mubr.msk.f32.gmra.mrb[24].mxu0 %vm393_vm0, %v6909_v9  ;;  %5455 = vmatprep.mubr.msk.f32.mxu1 %vm393_vm0, %v6570_v57  ;;  %v6937_v9 = vld [vmem:[%s6432_s14 + $0x172] sm:$0xff] }
  0x86   : > { %5679 = vmatprep.mubr.msk.f32.mxu0 %vm393_vm0, %v6912_v44  ;;  %7582 = vst [vmem:[#allocation37_spill] sm:$0xff] %v6937_v9  ;;  %v6940_v44 = vld [vmem:[%s6432_s14 + $0x182] sm:$0xff] }
  0x87   : > { %7583 = vst [vmem:[#allocation38_spill] sm:$0xff] %v6940_v44 }
  0x88   : > { %5456 = vmatmul.mubr.msk.f32.gmra.mrb[10].mxu1 %vm393_vm0, %v6587_v60 }
  0x89   : > { %5680 = vmatmul.mubr.msk.f32.gmra.mrb[26].mxu0 %vm393_vm0, %v6923_v39  ;;  %5458 = vmatprep.mubr.msk.f32.mxu1 %vm393_vm0, %v6593_v62  ;;  %v6951_v39 = vld [vmem:[%s6432_s14 + $0x18a] sm:$0xff] }
  0x8a   : > { %5682 = vmatprep.mubr.msk.f32.mxu0 %vm393_vm0, %v6926_v26  ;;  %7584 = vst [vmem:[#allocation39_spill] sm:$0xff] %v6951_v39 }
  0x8c   : > { %5459 = vmatmul.mubr.msk.f32.gmra.mrb[12].mxu1 %vm393_vm0, %v6608_v1 }
  0x8d   : > { %5683 = vmatmul.mubr.msk.f32.gmra.mrb[28].mxu0 %vm393_vm0, %v6937_v9  ;;  %5461 = vmatprep.mubr.msk.f32.mxu1 %vm393_vm0, %v6614_v3  ;;  %v6962_v9 = vld [vmem:[%s6432_s14 + $0xd9] sm:$0xff] }
  0x8e   : > { %5685 = vmatprep.mubr.msk.f32.mxu0 %vm393_vm0, %v6940_v44  ;;  %v6976_v44 = vld [vmem:[%s6432_s14 + $0xf1] sm:$0xff] }
  0x90   : > { %5462 = vmatmul.mubr.msk.f32.gmra.mrb[14].mxu1 %vm393_vm0, %v6633_v11 }
  0x91   : > { %5686 = vmatmul.mubr.msk.f32.gmra.mrb[30].mxu0 %vm393_vm0, %v6951_v39  ;;  %5464 = vmatprep.mubr.msk.f32.mxu1 %vm393_vm0, %v6640_v15  ;;  %v6971_v39 = vld [vmem:[%s6432_s14 + $0xe1] sm:$0xff] }
  0x92   : > { %5690 = vmatprep.mubr.msk.f32.mxu0 %vm393_vm0, %v6518_v47 }
  0x94   : > { %5465 = vmatmul.mubr.msk.f32.gmra.mrb[16].mxu1 %vm393_vm0, %v6656_v19 }
  0x95   : > { %5691 = vmatmul.mubr.msk.f32.vlgmr.msra.gmra.mrb[0].mxu0 %vm393_vm0, %v6537_v50  ;;  %5467 = vmatprep.mubr.msk.f32.mxu1 %vm393_vm0, %v6962_v9  ;;  %v7008_v50 = vld [vmem:[%s6432_s14 + $0x121] sm:$0xff] }
  0x96   : > { %5693 = vmatprep.mubr.msk.f32.mxu0 %vm393_vm0, %v6545_v52  ;;  %5739 = vmatpush3.msk.msra.mxu0 %vm490_vm1, %v6688_v30  ;;  %v6989_v52 = vld [vmem:[%s6432_s14 + $0xf9] sm:$0xff]  ;;  %v6994_v30 = vld [vmem:[%s6432_s14 + $0x109] sm:$0xff] }
  0x97   : > { %5788 = vmatprep.subr.msk.mxu0 %vm490_vm1, %v6798_v4 }
  0x98   : > { %5468 = vmatmul.mubr.msk.f32.gmra.mrb[18].mxu1 %vm393_vm0, %v6971_v39 }
  0x99   : > { %5694 = vmatmul.mubr.msk.f32.gmra.mrb[2].mxu0 %vm393_vm0, %v6559_v54  ;;  %5470 = vmatprep.mubr.msk.f32.mxu1 %vm393_vm0, %v6976_v44  ;;  %v7003_v54 = vld [vmem:[%s6432_s14 + $0x111] sm:$0xff] }
  0x9a   : > { %5696 = vmatprep.mubr.msk.f32.mxu0 %vm393_vm0, %v6567_v56  ;;  %v7022_v56 = vld [vmem:[%s6432_s14 + $0x139] sm:$0xff] }
  0x9c   : > { %5471 = vmatmul.mubr.msk.f32.gmra.mrb[20].mxu1 %vm393_vm0, %v6989_v52 }
  0x9d   : > { %5697 = vmatmul.mubr.msk.f32.gmra.mrb[4].mxu0 %vm393_vm0, %v6582_v59  ;;  %5473 = vmatprep.mubr.msk.f32.mxu1 %vm393_vm0, %v6994_v30  ;;  %v7017_v59 = vld [vmem:[%s6432_s14 + $0x129] sm:$0xff] }
  0x9e   : > { %5699 = vmatprep.mubr.msk.f32.mxu0 %vm393_vm0, %v6590_v61  ;;  %v7036_v61 = vld [vmem:[%s6432_s14 + $0x151] sm:$0xff] }
  0xa0   : > { %5474 = vmatmul.mubr.msk.f32.gmra.mrb[22].mxu1 %vm393_vm0, %v7003_v54 }
  0xa1   : > { %5700 = vmatmul.mubr.msk.f32.gmra.mrb[6].mxu0 %vm393_vm0, %v6603_v0  ;;  %5476 = vmatprep.mubr.msk.f32.mxu1 %vm393_vm0, %v7008_v50  ;;  %v7031_v0 = vld [vmem:[%s6432_s14 + $0x141] sm:$0xff] }
  0xa2   : > { %5702 = vmatprep.mubr.msk.f32.mxu0 %vm393_vm0, %v6611_v2  ;;  %v7050_v2 = vld [vmem:[%s6432_s14 + $0x169] sm:$0xff] }
  0xa4   : > { %5477 = vmatmul.mubr.msk.f32.gmra.mrb[24].mxu1 %vm393_vm0, %v7017_v59 }
  0xa5   : > { %5703 = vmatmul.mubr.msk.f32.gmra.mrb[8].mxu0 %vm393_vm0, %v6628_v10  ;;  %5479 = vmatprep.mubr.msk.f32.mxu1 %vm393_vm0, %v7022_v56  ;;  %v7045_v10 = vld [vmem:[%s6432_s14 + $0x159] sm:$0xff] }
  0xa6   : > { %5705 = vmatprep.mubr.msk.f32.mxu0 %vm393_vm0, %v6636_v12  ;;  %v1242_v12 = vld [vmem:[%s6432_s14 + $0x2] sm:$0xff] }
  0xa8   : > { %5480 = vmatmul.mubr.msk.f32.gmra.mrb[26].mxu1 %vm393_vm0, %v7031_v0 }
  0xa9   : > { %5706 = vmatmul.mubr.msk.f32.gmra.mrb[10].mxu0 %vm393_vm0, %v6651_v18  ;;  %5482 = vmatprep.mubr.msk.f32.mxu1 %vm393_vm0, %v7036_v61  ;;  %v7059_v18 = vld [vmem:[%s6432_s14 + $0x171] sm:$0xff] }
  0xaa   : > { %5708 = vmatprep.mubr.msk.f32.mxu0 %vm393_vm0, %v6659_v20  ;;  %v1243_v20 = vld [vmem:[%s6432_s14 + $0xa] sm:$0xff] }
  0xac   : > { %5483 = vmatmul.mubr.msk.f32.gmra.mrb[28].mxu1 %vm393_vm0, %v7045_v10 }
  0xad   : > { %5709 = vmatmul.mubr.msk.f32.gmra.mrb[12].mxu0 %vm393_vm0, %v6674_v25  ;;  %5485 = vmatprep.mubr.msk.f32.mxu1 %vm393_vm0, %v7050_v2 }
  0xae   : > { %5711 = vmatprep.mubr.msk.f32.mxu0 %vm393_vm0, %v6682_v28 }
  0xb0   : > { %5486 = vmatmul.mubr.msk.f32.gmra.mrb[30].mxu1 %vm393_vm0, %v7059_v18 }
  0xb1   : > { %5712 = vmatmul.mubr.msk.f32.gmra.mrb[14].mxu0 %vm393_vm0, %v6697_v31  ;;  %5490 = vmatprep.mubr.msk.f32.mxu1 %vm393_vm0, %v1242_v12  ;;  %v7116_v12 = vld [vmem:[%s6432_s14 + $0x180] sm:$0xff] }
  0xb2   : > { %5714 = vmatprep.mubr.msk.f32.mxu0 %vm393_vm0, %v6705_v33  ;;  %7585 = vst [vmem:[#allocation40_spill] sm:$0xff] %v7116_v12 }
  0xb4   : > { %5491 = vmatmul.mubr.msk.f32.vlgmr.msra.gmra.mrb[0].mxu1 %vm393_vm0, %v1243_v20  ;;  %v7586_v20 = vld [vmem:[#allocation19_spill] sm:$0xff] }
  0xb5   : > { %5715 = vmatmul.mubr.msk.f32.gmra.mrb[16].mxu0 %vm393_vm0, %v6721_v35  ;;  %5539 = vmatpush3.msk.msra.mxu1 %vm490_vm1, %v6667_v24  ;;  %v7127_v24 = vld [vmem:[%s6432_s14 + $0x188] sm:$0xff] }
  0xb6   : > { %5493 = vmatprep.mubr.msk.f32.mxu1 %vm393_vm0, %v6662_v22  ;;  %5717 = vmatprep.mubr.msk.f32.mxu0 %vm393_vm0, %v6729_v38  ;;  %v7587_v22 = vld [vmem:[#allocation20_spill] sm:$0xff]  ;;  %7588 = vst [vmem:[#allocation19_spill] sm:$0xff] %v7127_v24 }
  0xb7   : > { %5838 = vmatprep.subr.msk.mxu1 %vm490_vm1, %v6479_v36 }
  0xb8   : > { %5494 = vmatmul.mubr.msk.f32.gmra.mrb[2].mxu1 %vm393_vm0, %v6679_v27  ;;  %v4920_v27 = vld [vmem:[%s6432_s14 + $0x198] sm:$0xff] }
  0xb9   : > { %5718 = vmatmul.mubr.msk.f32.gmra.mrb[18].mxu0 %vm393_vm0, %v6741_v43  ;;  %5496 = vmatprep.mubr.msk.f32.mxu1 %vm393_vm0, %v6685_v29 }
  0xba   : > { %5720 = vmatprep.mubr.msk.f32.mxu0 %vm393_vm0, %v6752_v63 }
  0xbc   : > { %5497 = vmatmul.mubr.msk.f32.gmra.mrb[4].mxu1 %vm393_vm0, %v6702_v32 }
  0xbd   : > { %5721 = vmatmul.mubr.msk.f32.gmra.mrb[20].mxu0 %vm393_vm0, %v6766_v14  ;;  %5499 = vmatprep.mubr.msk.f32.mxu1 %vm393_vm0, %v6710_v34 }
  0xbe   : > { %5723 = vmatprep.mubr.msk.f32.mxu0 %vm393_vm0, %v6774_v16 }
  0xc0   : > { %5500 = vmatmul.mubr.msk.f32.gmra.mrb[6].mxu1 %vm393_vm0, %v6726_v37 }
  0xc1   : > { %5724 = vmatmul.mubr.msk.f32.gmra.mrb[22].mxu0 %vm393_vm0, %v6787_v23  ;;  %5502 = vmatprep.mubr.msk.f32.mxu1 %vm393_vm0, %v6732_v40 }
  0xc2   : > { %5726 = vmatprep.mubr.msk.f32.mxu0 %vm393_vm0, %v6795_v48  ;;  %v7591_v48 = vld [vmem:[#allocation25_spill] sm:$0xff] }
  0xc4   : > { %5503 = vmatmul.mubr.msk.f32.gmra.mrb[8].mxu1 %vm393_vm0, %v6749_v58 }
  0xc5   : > { %5727 = vmatmul.mubr.msk.f32.gmra.mrb[24].mxu0 %vm393_vm0, %v6810_v7  ;;  %5505 = vmatprep.mubr.msk.f32.mxu1 %vm393_vm0, %v6756_v5  ;;  %v7589_v7 = vld [vmem:[#allocation21_spill] sm:$0xff] }
  0xc6   : > { %5729 = vmatprep.mubr.msk.f32.mxu0 %vm393_vm0, %v6818_v21  ;;  %v7590_v21 = vld [vmem:[#allocation23_spill] sm:$0xff] }
  0xc8   : > { %5506 = vmatmul.mubr.msk.f32.gmra.mrb[10].mxu1 %vm393_vm0, %v7586_v20 }
  0xc9   : > { %5730 = vmatmul.mubr.msk.f32.gmra.mrb[26].mxu0 %vm393_vm0, %v6830_v41  ;;  %5508 = vmatprep.mubr.msk.f32.mxu1 %vm393_vm0, %v7587_v22  ;;  %v4921_v41 = vld [vmem:[%s6432_s14 + $0x1a0] sm:$0xff] }
  0xca   : > { %5732 = vmatprep.mubr.msk.f32.mxu0 %vm393_vm0, %v7116_v12  ;;  %v7592_v12 = vld [vmem:[#allocation27_spill] sm:$0xff] }
  0xcc   : > { %5509 = vmatmul.mubr.msk.f32.gmra.mrb[12].mxu1 %vm393_vm0, %v7589_v7 }
  0xcd   : > { %5733 = vmatmul.mubr.msk.f32.gmra.mrb[28].mxu0 %vm393_vm0, %v7127_v24  ;;  %5511 = vmatprep.mubr.msk.f32.mxu1 %vm393_vm0, %v7590_v21  ;;  %v7593_v24 = vld [vmem:[#allocation29_spill] sm:$0xff] }
  0xce   : > { %5735 = vmatprep.mubr.msk.f32.mxu0 %vm393_vm0, %v4920_v27  ;;  %v7254_v27 = vld [vmem:[%s6432_s14 + $0x181] sm:$0xff] }
  0xd0   : > { %5512 = vmatmul.mubr.msk.f32.gmra.mrb[14].mxu1 %vm393_vm0, %v7591_v48 }
  0xd1   : > { %5736 = vmatmul.mubr.msk.f32.gmra.mrb[30].mxu0 %vm393_vm0, %v4921_v41  ;;  %5514 = vmatprep.mubr.msk.f32.mxu1 %vm393_vm0, %v7592_v12  ;;  %v7594_v41 = vld [vmem:[#allocation30_spill] sm:$0xff] }
  0xd2   : > { %5740 = vmatprep.mubr.msk.f32.mxu0 %vm393_vm0, %v6496_v42  ;;  %v7595_v42 = vld [vmem:[#allocation31_spill] sm:$0xff] }
  0xd4   : > { %5515 = vmatmul.mubr.msk.f32.gmra.mrb[16].mxu1 %vm393_vm0, %v6835_v8 }
  0xd5   : > { %5741 = vmatmul.mubr.msk.f32.vlgmr.msra.gmra.mrb[0].mxu0 %vm393_vm0, %v6515_v46  ;;  %5517 = vmatprep.mubr.msk.f32.mxu1 %vm393_vm0, %v7593_v24  ;;  %v7596_v46 = vld [vmem:[#allocation32_spill] sm:$0xff] }
  0xd6   : > { %5743 = vmatprep.mubr.msk.f32.mxu0 %vm393_vm0, %v6524_v49  ;;  %5789 = vmatpush3.msk.msra.mxu0 %vm490_vm1, %v6798_v4  ;;  %v7597_v49 = vld [vmem:[#allocation33_spill] sm:$0xff]  ;;  %v7611_v4 = vld [vmem:[#allocation14_spill] sm:$0xff] }
  0xd8   : > { %5518 = vmatmul.mubr.msk.f32.gmra.mrb[18].mxu1 %vm393_vm0, %v6850_v45 }
  0xd9   : > { %5744 = vmatmul.mubr.msk.f32.gmra.mrb[2].mxu0 %vm393_vm0, %v6542_v51  ;;  %5520 = vmatprep.mubr.msk.f32.mxu1 %vm393_vm0, %v6853_v6  ;;  %v7598_v51 = vld [vmem:[#allocation34_spill] sm:$0xff] }
  0xda   : > { %5746 = vmatprep.mubr.msk.f32.mxu0 %vm393_vm0, %v6550_v53  ;;  %v7599_v53 = vld [vmem:[#allocation35_spill] sm:$0xff] }
  0xdc   : > { %5521 = vmatmul.mubr.msk.f32.gmra.mrb[20].mxu1 %vm393_vm0, %v6865_v13 }
  0xdd   : > { %5747 = vmatmul.mubr.msk.f32.gmra.mrb[4].mxu0 %vm393_vm0, %v6564_v55  ;;  %5523 = vmatprep.mubr.msk.f32.mxu1 %vm393_vm0, %v6868_v17  ;;  %v7600_v55 = vld [vmem:[#allocation36_spill] sm:$0xff] }
  0xde   : > { %5749 = vmatprep.mubr.msk.f32.mxu0 %vm393_vm0, %v6570_v57  ;;  %v7601_v57 = vld [vmem:[#allocation37_spill] sm:$0xff] }
  0xe0   : > { %5524 = vmatmul.mubr.msk.f32.gmra.mrb[22].mxu1 %vm393_vm0, %v7594_v41 }
  0xe1   : > { %5750 = vmatmul.mubr.msk.f32.gmra.mrb[6].mxu0 %vm393_vm0, %v6587_v60  ;;  %5526 = vmatprep.mubr.msk.f32.mxu1 %vm393_vm0, %v7595_v42  ;;  %v7602_v60 = vld [vmem:[#allocation5_spill] sm:$0xff] }
  0xe2   : > { %5752 = vmatprep.mubr.msk.f32.mxu0 %vm393_vm0, %v6593_v62  ;;  %v7603_v62 = vld [vmem:[#allocation6_spill] sm:$0xff] }
  0xe4   : > { %5527 = vmatmul.mubr.msk.f32.gmra.mrb[24].mxu1 %vm393_vm0, %v7596_v46 }
  0xe5   : > { %5753 = vmatmul.mubr.msk.f32.gmra.mrb[8].mxu0 %vm393_vm0, %v6608_v1  ;;  %5529 = vmatprep.mubr.msk.f32.mxu1 %vm393_vm0, %v7597_v49  ;;  %v7604_v1 = vld [vmem:[#allocation7_spill] sm:$0xff] }
  0xe6   : > { %5755 = vmatprep.mubr.msk.f32.mxu0 %vm393_vm0, %v6614_v3  ;;  %v7605_v3 = vld [vmem:[#allocation8_spill] sm:$0xff] }
  0xe8   : > { %5530 = vmatmul.mubr.msk.f32.gmra.mrb[26].mxu1 %vm393_vm0, %v7598_v51 }
  0xe9   : > { %5756 = vmatmul.mubr.msk.f32.gmra.mrb[10].mxu0 %vm393_vm0, %v6633_v11  ;;  %5532 = vmatprep.mubr.msk.f32.mxu1 %vm393_vm0, %v7599_v53  ;;  %v7608_v11 = vld [vmem:[#allocation11_spill] sm:$0xff] }
  0xea   : > { %5758 = vmatprep.mubr.msk.f32.mxu0 %vm393_vm0, %v6640_v15  ;;  %v7609_v15 = vld [vmem:[#allocation12_spill] sm:$0xff] }
  0xec   : > { %5533 = vmatmul.mubr.msk.f32.gmra.mrb[28].mxu1 %vm393_vm0, %v7600_v55 }
  0xed   : > { %5759 = vmatmul.mubr.msk.f32.gmra.mrb[12].mxu0 %vm393_vm0, %v6656_v19  ;;  %5535 = vmatprep.mubr.msk.f32.mxu1 %vm393_vm0, %v6926_v26  ;;  %v7610_v19 = vld [vmem:[#allocation13_spill] sm:$0xff] }
  0xee   : > { %5761 = vmatprep.mubr.msk.f32.mxu0 %vm393_vm0, %v6962_v9 }
  0xf0   : > { %5536 = vmatmul.mubr.msk.f32.gmra.mrb[30].mxu1 %vm393_vm0, %v7601_v57 }
  0xf1   : > { %5762 = vmatmul.mubr.msk.f32.gmra.mrb[14].mxu0 %vm393_vm0, %v6971_v39  ;;  %5540 = vmatprep.mubr.msk.f32.mxu1 %vm393_vm0, %v7602_v60  ;;  %v7612_v60 = vld [vmem:[#allocation15_spill] sm:$0xff] }
  0xf2   : > { %5764 = vmatprep.mubr.msk.f32.mxu0 %vm393_vm0, %v6976_v44 }
  0xf4   : > { %5541 = vmatmul.mubr.msk.f32.vlgmr.msra.gmra.mrb[0].mxu1 %vm393_vm0, %v7603_v62  ;;  %v7613_v62 = vld [vmem:[#allocation16_spill] sm:$0xff] }
  0xf5   : > { %5765 = vmatmul.mubr.msk.f32.gmra.mrb[16].mxu0 %vm393_vm0, %v6989_v52  ;;  %5839 = vmatpush3.msk.msra.mxu1 %vm490_vm1, %v6479_v36  ;;  %v7606_v36 = vld [vmem:[#allocation9_spill] sm:$0xff] }
  0xf6   : > { %5543 = vmatprep.mubr.msk.f32.mxu1 %vm393_vm0, %v6518_v47  ;;  %5767 = vmatprep.mubr.msk.f32.mxu0 %vm393_vm0, %v6994_v30  ;;  %v7607_v47 = vld [vmem:[#allocation10_spill] sm:$0xff] }
  0xf8   : > { %5544 = vmatmul.mubr.msk.f32.gmra.mrb[2].mxu1 %vm393_vm0, %v7604_v1  ;;  %v7265_v1 = vld [vmem:[%s6432_s14 + $0x189] sm:$0xff] }
  0xf9   : > { %5768 = vmatmul.mubr.msk.f32.gmra.mrb[18].mxu0 %vm393_vm0, %v7003_v54  ;;  %5546 = vmatprep.mubr.msk.f32.mxu1 %vm393_vm0, %v7605_v3  ;;  %v4986_v3 = vld [vmem:[%s6432_s14 + $0x199] sm:$0xff] }
  0xfa   : > { %5770 = vmatprep.mubr.msk.f32.mxu0 %vm393_vm0, %v7008_v50 }
  0xfc   : > { %5547 = vmatmul.mubr.msk.f32.gmra.mrb[4].mxu1 %vm393_vm0, %v7606_v36  ;;  %v7614_v36 = vld [vmem:[#allocation17_spill] sm:$0xff] }
  0xfd   : > { %5771 = vmatmul.mubr.msk.f32.gmra.mrb[20].mxu0 %vm393_vm0, %v7017_v59  ;;  %5549 = vmatprep.mubr.msk.f32.mxu1 %vm393_vm0, %v7607_v47  ;;  %v7615_v47 = vld [vmem:[#allocation18_spill] sm:$0xff] }
  0xfe   : > { %5773 = vmatprep.mubr.msk.f32.mxu0 %vm393_vm0, %v7022_v56 }
 0x100   : > { %5550 = vmatmul.mubr.msk.f32.gmra.mrb[6].mxu1 %vm393_vm0, %v7608_v11  ;;  %v4987_v11 = vld [vmem:[%s6432_s14 + $0x1a1] sm:$0xff] }
 0x101   : > { %5774 = vmatmul.mubr.msk.f32.gmra.mrb[22].mxu0 %vm393_vm0, %v7031_v0  ;;  %5552 = vmatprep.mubr.msk.f32.mxu1 %vm393_vm0, %v7609_v15 }
 0x102   : > { %5776 = vmatprep.mubr.msk.f32.mxu0 %vm393_vm0, %v7036_v61 }
 0x104   : > { %5553 = vmatmul.mubr.msk.f32.gmra.mrb[8].mxu1 %vm393_vm0, %v7610_v19 }
 0x105   : > { %5777 = vmatmul.mubr.msk.f32.gmra.mrb[24].mxu0 %vm393_vm0, %v7045_v10  ;;  %5555 = vmatprep.mubr.msk.f32.mxu1 %vm393_vm0, %v7611_v4 }
 0x106   : > { %5779 = vmatprep.mubr.msk.f32.mxu0 %vm393_vm0, %v7050_v2 }
 0x108   : > { %5556 = vmatmul.mubr.msk.f32.gmra.mrb[10].mxu1 %vm393_vm0, %v7612_v60 }
 0x109   : > { %5780 = vmatmul.mubr.msk.f32.gmra.mrb[26].mxu0 %vm393_vm0, %v7059_v18  ;;  %5558 = vmatprep.mubr.msk.f32.mxu1 %vm393_vm0, %v7613_v62 }
 0x10a   : > { %5782 = vmatprep.mubr.msk.f32.mxu0 %vm393_vm0, %v7254_v27 }
 0x10c   : > { %5559 = vmatmul.mubr.msk.f32.gmra.mrb[12].mxu1 %vm393_vm0, %v7614_v36 }
 0x10d   : > { %5783 = vmatmul.mubr.msk.f32.gmra.mrb[28].mxu0 %vm393_vm0, %v7265_v1  ;;  %5561 = vmatprep.mubr.msk.f32.mxu1 %vm393_vm0, %v7615_v47 }
 0x10e   : > { %5785 = vmatprep.mubr.msk.f32.mxu0 %vm393_vm0, %v4986_v3 }
 0x110   : > { %5562 = vmatmul.mubr.msk.f32.gmra.mrb[14].mxu1 %vm393_vm0, %v6674_v25  ;;  %v7616_v25 = vld [vmem:[#allocation22_spill] sm:$0xff] }
 0x111   : > { %5786 = vmatmul.mubr.msk.f32.gmra.mrb[30].mxu0 %vm393_vm0, %v4987_v11  ;;  %5564 = vmatprep.mubr.msk.f32.mxu1 %vm393_vm0, %v6682_v28  ;;  %v7617_v28 = vld [vmem:[#allocation24_spill] sm:$0xff] }
 0x112   : > { %5790 = vmatprep.mubr.msk.f32.mxu0 %vm393_vm0, %v6685_v29  ;;  %v7618_v29 = vld [vmem:[#allocation26_spill] sm:$0xff] }
 0x114   : > { %5565 = vmatmul.mubr.msk.f32.gmra.mrb[16].mxu1 %vm393_vm0, %v6697_v31  ;;  %v7619_v31 = vld [vmem:[#allocation28_spill] sm:$0xff] }
 0x115   : > { %5791 = vmatmul.mubr.msk.f32.vlgmr.msra.gmra.mrb[0].mxu0 %vm393_vm0, %v6702_v32  ;;  %5567 = vmatprep.mubr.msk.f32.mxu1 %vm393_vm0, %v6705_v33  ;;  %v7620_v32 = vld [vmem:[#allocation40_spill] sm:$0xff]  ;;  %v7621_v33 = vld [vmem:[#allocation19_spill] sm:$0xff] }
 0x116   : > { %5793 = vmatprep.mubr.msk.f32.mxu0 %vm393_vm0, %v6710_v34 }
 0x118   : > { %5568 = vmatmul.mubr.msk.f32.gmra.mrb[18].mxu1 %vm393_vm0, %v6721_v35  ;;  %v273_v35 = vstv %s4589_s5 }
 0x119   : > { %5794 = vmatmul.mubr.msk.f32.gmra.mrb[2].mxu0 %vm393_vm0, %v6726_v37  ;;  %5570 = vmatprep.mubr.msk.f32.mxu1 %vm393_vm0, %v6729_v38 }
 0x11a   : > { %5796 = vmatprep.mubr.msk.f32.mxu0 %vm393_vm0, %v6732_v40 }
 0x11c   : > { %5571 = vmatmul.mubr.msk.f32.gmra.mrb[20].mxu1 %vm393_vm0, %v6741_v43  ;;  %v275_v43 = vstv %s4590_s7 }
 0x11d   : > { %5797 = vmatmul.mubr.msk.f32.gmra.mrb[4].mxu0 %vm393_vm0, %v6749_v58  ;;  %5573 = vmatprep.mubr.msk.f32.mxu1 %vm393_vm0, %v6752_v63 }
 0x11e   : > { %5799 = vmatprep.mubr.msk.f32.mxu0 %vm393_vm0, %v6756_v5  ;;  %v281_v5 = vlaneseq }
 0x120   : > { %5574 = vmatmul.mubr.msk.f32.gmra.mrb[22].mxu1 %vm393_vm0, %v6766_v14 }
 0x121   : > { %5800 = vmatmul.mubr.msk.f32.gmra.mrb[6].mxu0 %vm393_vm0, %v7586_v20  ;;  %5576 = vmatprep.mubr.msk.f32.mxu1 %vm393_vm0, %v6774_v16 }
 0x122   : > { %5802 = vmatprep.mubr.msk.f32.mxu0 %vm393_vm0, %v7587_v22 }
 0x124   : > { %5577 = vmatmul.mubr.msk.f32.gmra.mrb[24].mxu1 %vm393_vm0, %v6787_v23 }
 0x125   : > { %5803 = vmatmul.mubr.msk.f32.gmra.mrb[8].mxu0 %vm393_vm0, %v7589_v7  ;;  %5579 = vmatprep.mubr.msk.f32.mxu1 %vm393_vm0, %v7616_v25 }
 0x126   : > { %5805 = vmatprep.mubr.msk.f32.mxu0 %vm393_vm0, %v7590_v21 }
 0x128   : > { %5580 = vmatmul.mubr.msk.f32.gmra.mrb[26].mxu1 %vm393_vm0, %v7617_v28 }
 0x129   : > { %5806 = vmatmul.mubr.msk.f32.gmra.mrb[10].mxu0 %vm393_vm0, %v7591_v48  ;;  %5582 = vmatprep.mubr.msk.f32.mxu1 %vm393_vm0, %v7618_v29  ;;  %v278_v48 = vstv %s4588_s10 }
 0x12a   : > { %5808 = vmatprep.mubr.msk.f32.mxu0 %vm393_vm0, %v7592_v12 }
 0x12c   : > { %5583 = vmatmul.mubr.msk.f32.gmra.mrb[28].mxu1 %vm393_vm0, %v7619_v31 }
 0x12d   : > { %5809 = vmatmul.mubr.msk.f32.gmra.mrb[12].mxu0 %vm393_vm0, %v6835_v8  ;;  %5585 = vmatprep.mubr.msk.f32.mxu1 %vm393_vm0, %v7620_v32 }
 0x12e   : > { %5811 = vmatprep.mubr.msk.f32.mxu0 %vm393_vm0, %v7593_v24 }
 0x130   : > { %5586 = vmatmul.mubr.msk.f32.gmra.mrb[30].mxu1 %vm393_vm0, %v7621_v33 }
 0x131   : > { %5812 = vmatmul.mubr.msk.f32.gmra.mrb[14].mxu0 %vm393_vm0, %v6850_v45  ;;  %5614 = vmatprep.mubr.msk.f32.mxu1 %vm393_vm0, %v6962_v9  ;;  %v7622_v45 = vld [vmem:[#allocation38_spill] sm:$0xff] }
 0x132   : > { %5814 = vmatprep.mubr.msk.f32.mxu0 %vm393_vm0, %v6853_v6 }
 0x134   : > { %5615 = vmatmul.mubr.msk.f32.vlgmr.msra.gmra.mrb[16].mxu1 %vm393_vm0, %v6971_v39 }
 0x135   : > { %5815 = vmatmul.mubr.msk.f32.gmra.mrb[16].mxu0 %vm393_vm0, %v6865_v13  ;;  %5617 = vmatprep.mubr.msk.f32.mxu1 %vm393_vm0, %v6976_v44 }
 0x136   : > { %5817 = vmatprep.mubr.msk.f32.mxu0 %vm393_vm0, %v6868_v17  ;;  %v282_v17 = vshrl.u32 %v281_v5, 7 }
 0x138   : > { %5618 = vmatmul.mubr.msk.f32.gmra.mrb[18].mxu1 %vm393_vm0, %v6989_v52  ;;  %v7623_v52 = vld [vmem:[#allocation39_spill] sm:$0xff]  ;;  %v283_v21 = vsub.s32 0, %v282_v17 }
 0x139   : > { %5818 = vmatmul.mubr.msk.f32.gmra.mrb[18].mxu0 %vm393_vm0, %v7594_v41  ;;  %5620 = vmatprep.mubr.msk.f32.mxu1 %vm393_vm0, %v6994_v30 }
 0x13a   : > { %5820 = vmatprep.mubr.msk.f32.mxu0 %vm393_vm0, %v7595_v42 }
 0x13c   : > { %5621 = vmatmul.mubr.msk.f32.gmra.mrb[20].mxu1 %vm393_vm0, %v7003_v54  ;;  %v5053_v54 = vld [vmem:[%s6432_s14 + $0x1a2] sm:$0xff] }
 0x13d   : > { %5821 = vmatmul.mubr.msk.f32.gmra.mrb[20].mxu0 %vm393_vm0, %v7596_v46  ;;  %5623 = vmatprep.mubr.msk.f32.mxu1 %vm393_vm0, %v7008_v50  ;;  %v5052_v50 = vld [vmem:[%s6432_s14 + $0x19a] sm:$0xff]  ;;  %s7417_s14 = scalar_lea.vmem %s7495_s4, %s5090_s11 }
 0x13e   : > { %5823 = vmatprep.mubr.msk.f32.mxu0 %vm393_vm0, %v7597_v49 }
 0x140   : > { %5624 = vmatmul.mubr.msk.f32.gmra.mrb[22].mxu1 %vm393_vm0, %v7017_v59 }
 0x141   : > { %5824 = vmatmul.mubr.msk.f32.gmra.mrb[22].mxu0 %vm393_vm0, %v7598_v51  ;;  %5626 = vmatprep.mubr.msk.f32.mxu1 %vm393_vm0, %v7022_v56 }
 0x142   : > { %5826 = vmatprep.mubr.msk.f32.mxu0 %vm393_vm0, %v7599_v53 }
 0x144   : > { %5627 = vmatmul.mubr.msk.f32.gmra.mrb[24].mxu1 %vm393_vm0, %v7031_v0  ;;  %v269_v0 = vld [vmem:[%s7494_s3] sm:$0x1] }
 0x145   : > { %5827 = vmatmul.mubr.msk.f32.gmra.mrb[24].mxu0 %vm393_vm0, %v7600_v55  ;;  %5629 = vmatprep.mubr.msk.f32.mxu1 %vm393_vm0, %v7036_v61 }
 0x146   : > { %5829 = vmatprep.mubr.msk.f32.mxu0 %vm393_vm0, %v6926_v26 }
 0x148   : > { %5630 = vmatmul.mubr.msk.f32.gmra.mrb[26].mxu1 %vm393_vm0, %v7045_v10 }
 0x149   : > { %5830 = vmatmul.mubr.msk.f32.gmra.mrb[26].mxu0 %vm393_vm0, %v7601_v57  ;;  %5632 = vmatprep.mubr.msk.f32.mxu1 %vm393_vm0, %v7050_v2  ;;  %v271_v2 = vstv %s270_s6 }
 0x14a   : > { %5832 = vmatprep.mubr.msk.f32.mxu0 %vm393_vm0, %v7622_v45 }
 0x14c   : > { %5633 = vmatmul.mubr.msk.f32.gmra.mrb[28].mxu1 %vm393_vm0, %v7059_v18  ;;  %v272_v18 = vmax.f32 %v271_v2, %v269_v0 }
 0x14d   : > { %5833 = vmatmul.mubr.msk.f32.gmra.mrb[28].mxu0 %vm393_vm0, %v7623_v52  ;;  %5635 = vmatprep.mubr.msk.f32.mxu1 %vm393_vm0, %v7254_v27 }
 0x14e   : > { %5835 = vmatprep.mubr.msk.f32.mxu0 %vm393_vm0, %v5052_v50  ;;  %v274_v38 = vmin.f32 %v273_v35, %v272_v18 }
 0x150   : > { %5636 = vmatmul.mubr.msk.f32.gmra.mrb[30].mxu1 %vm393_vm0, %v7265_v1  ;;  %v276_v63 = vmul.f32 %v275_v43, %v274_v38 }
 0x151   : > { %5836 = vmatmul.mubr.msk.f32.gmra.mrb[30].mxu0 %vm393_vm0, %v5053_v54 }
 0x152   : > { %v6257_v16 = vround.rtne.f32 %v276_v63 }
 0x154   : > { %v279_v7 = vmul.f32 %v6257_v16, %v278_v48 }
 0x156   : > { %v7410_v44 = vrot.slane %v279_v7, %v283_v21 }
 0x1c7   : > { %v5542_v56 = vpop.f32.mrb[0].mxu1 }
 0x1c8   : > { %v1938_v59 = vpop.f32.mrb[1].mxu1  ;;  %v5842_v30 = vadd.f32 %v5542_v56, %v7410_v44 }
 0x1c9   : > { %v5848_v12 = vadd.f32 %v1938_v59, %v7410_v44 }
 0x1cb   : > { %v5545_v61 = vpop.f32.mrb[2].mxu1 }
 0x1cc   : > { %v1948_v10 = vpop.f32.mrb[3].mxu1  ;;  %v5854_v42 = vadd.f32 %v5545_v61, %v7410_v44 }
 0x1cd   : > { %v5860_v46 = vadd.f32 %v1948_v10, %v7410_v44 }
 0x1cf   : > { %v5548_v34 = vpop.f32.mrb[4].mxu1 }
 0x1d0   : > { %v1958_v37 = vpop.f32.mrb[5].mxu1  ;;  %v5866_v57 = vadd.f32 %v5548_v34, %v7410_v44 }
 0x1d1   : > { %v5872_v15 = vadd.f32 %v1958_v37, %v7410_v44 }
 0x1d3   : > { %v5551_v40 = vpop.f32.mrb[6].mxu1 }
 0x1d4   : > { %v1968_v58 = vpop.f32.mrb[7].mxu1  ;;  %v5878_v62 = vadd.f32 %v5551_v40, %v7410_v44 }
 0x1d5   : > { %v5884_v1 = vadd.f32 %v1968_v58, %v7410_v44 }
 0x1d7   : > { %v5554_v14 = vpop.f32.mrb[8].mxu1 }
 0x1d8   : > { %v1978_v6 = vpop.f32.mrb[9].mxu1  ;;  %v5890_v25 = vadd.f32 %v5554_v14, %v7410_v44 }
 0x1d9   : > { %v5896_v28 = vadd.f32 %v1978_v6, %v7410_v44 }
 0x1db   : > { %v5557_v23 = vpop.f32.mrb[10].mxu1 }
 0x1dc   : > { %v1988_v8 = vpop.f32.mrb[11].mxu1  ;;  %v5902_v45 = vadd.f32 %v5557_v23, %v7410_v44 }
 0x1dd   : > { %v5908_v50 = vadd.f32 %v1988_v8, %v7410_v44 }
 0x1df   : > { %v5560_v13 = vpop.f32.mrb[12].mxu1 }
 0x1e0   : > { %v1998_v9 = vpop.f32.mrb[13].mxu1  ;;  %v5914_v61 = vadd.f32 %v5560_v13, %v7410_v44 }
 0x1e1   : > { %v5920_v0 = vadd.f32 %v1998_v9, %v7410_v44 }
 0x1e3   : > { %v5563_v39 = vpop.f32.mrb[14].mxu1 }
 0x1e4   : > { %v2008_v26 = vpop.f32.mrb[15].mxu1  ;;  %v5926_v35 = vadd.f32 %v5563_v39, %v7410_v44 }
 0x1e5   : > { %v5932_v37 = vadd.f32 %v2008_v26, %v7410_v44 }
 0x1e8   : > { %v5792_v20 = vpop.f32.mrb[0].mxu0 }
 0x1e9   : > { %v5845_v22 = vadd.f32 %v5842_v30, %v5792_v20  ;;  %v4234_v24 = vpop.f32.mrb[1].mxu0 }
 0x1ea   : > { %v5851_v41 = vadd.f32 %v5848_v12, %v4234_v24 }
 0x1eb   : > { %4426 = vst [vmem:[%s7417_s14 + $0x8] sm:$0xff] %v5845_v22 }
 0x1ec   : > { %4425 = vst [vmem:[%s7417_s14] sm:$0xff] %v5851_v41  ;;  %v5795_v49 = vpop.f32.mrb[2].mxu0 }
 0x1ed   : > { %v5857_v51 = vadd.f32 %v5854_v42, %v5795_v49  ;;  %v4244_v53 = vpop.f32.mrb[3].mxu0 }
 0x1ee   : > { %v5863_v55 = vadd.f32 %v5860_v46, %v4244_v53 }
 0x1ef   : > { %4428 = vst [vmem:[%s7417_s14 + $0x18] sm:$0xff] %v5857_v51 }
 0x1f0   : > { %4427 = vst [vmem:[%s7417_s14 + $0x10] sm:$0xff] %v5863_v55  ;;  %v5798_v19 = vpop.f32.mrb[4].mxu0 }
 0x1f1   : > { %v5869_v4 = vadd.f32 %v5866_v57, %v5798_v19  ;;  %v4254_v27 = vpop.f32.mrb[5].mxu0 }
 0x1f2   : > { %v5875_v60 = vadd.f32 %v5872_v15, %v4254_v27 }
 0x1f3   : > { %4430 = vst [vmem:[%s7417_s14 + $0x28] sm:$0xff] %v5869_v4 }
 0x1f4   : > { %4429 = vst [vmem:[%s7417_s14 + $0x20] sm:$0xff] %v5875_v60  ;;  %v5801_v3 = vpop.f32.mrb[6].mxu0 }
 0x1f5   : > { %v5881_v36 = vadd.f32 %v5878_v62, %v5801_v3  ;;  %v4264_v47 = vpop.f32.mrb[7].mxu0 }
 0x1f6   : > { %v5887_v11 = vadd.f32 %v5884_v1, %v4264_v47 }
 0x1f7   : > { %4432 = vst [vmem:[%s7417_s14 + $0x38] sm:$0xff] %v5881_v36 }
 0x1f8   : > { %4431 = vst [vmem:[%s7417_s14 + $0x30] sm:$0xff] %v5887_v11  ;;  %v5804_v29 = vpop.f32.mrb[8].mxu0 }
 0x1f9   : > { %v5893_v31 = vadd.f32 %v5890_v25, %v5804_v29  ;;  %v4274_v32 = vpop.f32.mrb[9].mxu0 }
 0x1fa   : > { %v5899_v33 = vadd.f32 %v5896_v28, %v4274_v32 }
 0x1fb   : > { %4434 = vst [vmem:[%s7417_s14 + $0x48] sm:$0xff] %v5893_v31 }
 0x1fc   : > { %4433 = vst [vmem:[%s7417_s14 + $0x40] sm:$0xff] %v5899_v33  ;;  %v5807_v52 = vpop.f32.mrb[10].mxu0 }
 0x1fd   : > { %v5905_v54 = vadd.f32 %v5902_v45, %v5807_v52  ;;  %v4284_v56 = vpop.f32.mrb[11].mxu0 }
 0x1fe   : > { %v5911_v59 = vadd.f32 %v5908_v50, %v4284_v56 }
 0x1ff   : > { %4436 = vst [vmem:[%s7417_s14 + $0x58] sm:$0xff] %v5905_v54 }
 0x200   : > { %4435 = vst [vmem:[%s7417_s14 + $0x50] sm:$0xff] %v5911_v59  ;;  %v5810_v2 = vpop.f32.mrb[12].mxu0 }
 0x201   : > { %v5917_v10 = vadd.f32 %v5914_v61, %v5810_v2  ;;  %v4294_v18 = vpop.f32.mrb[13].mxu0 }
 0x202   : > { %v5923_v34 = vadd.f32 %v5920_v0, %v4294_v18 }
 0x203   : > { %4438 = vst [vmem:[%s7417_s14 + $0x68] sm:$0xff] %v5917_v10 }
 0x204   : > { %4437 = vst [vmem:[%s7417_s14 + $0x60] sm:$0xff] %v5923_v34  ;;  %v5813_v38 = vpop.f32.mrb[14].mxu0 }
 0x205   : > { %v5929_v40 = vadd.f32 %v5926_v35, %v5813_v38  ;;  %v4304_v43 = vpop.f32.mrb[15].mxu0 }
 0x206   : > { %v5935_v58 = vadd.f32 %v5932_v37, %v4304_v43 }
 0x207   : > { %4440 = vst [vmem:[%s7417_s14 + $0x78] sm:$0xff] %v5929_v40  ;;  %v5616_v63 = vpop.f32.mrb[16].mxu1 }
 0x208   : > { %4439 = vst [vmem:[%s7417_s14 + $0x70] sm:$0xff] %v5935_v58  ;;  %v5938_v5 = vadd.f32 %v5616_v63, %v7410_v44  ;;  %v5816_v14 = vpop.f32.mrb[16].mxu0  ;;  %v2477_v6 = vpop.f32.mrb[17].mxu1 }
 0x209   : > { %v5944_v16 = vadd.f32 %v2477_v6, %v7410_v44  ;;  %v4314_v17 = vpop.f32.mrb[17].mxu0 }
 0x20a   : > { %v5941_v23 = vadd.f32 %v5938_v5, %v5816_v14 }
 0x20b   : > { %v5947_v48 = vadd.f32 %v5944_v16, %v4314_v17  ;;  %v5619_v8 = vpop.f32.mrb[18].mxu1 }
 0x20c   : > { %4442 = vst [vmem:[%s7417_s14 + $0x88] sm:$0xff] %v5941_v23  ;;  %v5950_v7 = vadd.f32 %v5619_v8, %v7410_v44  ;;  %v5819_v21 = vpop.f32.mrb[18].mxu0  ;;  %v2487_v13 = vpop.f32.mrb[19].mxu1 }
 0x20d   : > { %4441 = vst [vmem:[%s7417_s14 + $0x80] sm:$0xff] %v5947_v48  ;;  %v5956_v9 = vadd.f32 %v2487_v13, %v7410_v44  ;;  %v4324_v39 = vpop.f32.mrb[19].mxu0 }
 0x20e   : > { %v5953_v26 = vadd.f32 %v5950_v7, %v5819_v21 }
 0x20f   : > { %v5959_v30 = vadd.f32 %v5956_v9, %v4324_v39  ;;  %v5622_v12 = vpop.f32.mrb[20].mxu1 }
 0x210   : > { %4444 = vst [vmem:[%s7417_s14 + $0x98] sm:$0xff] %v5953_v26  ;;  %v5962_v20 = vadd.f32 %v5622_v12, %v7410_v44  ;;  %v5822_v22 = vpop.f32.mrb[20].mxu0  ;;  %v2497_v24 = vpop.f32.mrb[21].mxu1 }
 0x211   : > { %4443 = vst [vmem:[%s7417_s14 + $0x90] sm:$0xff] %v5959_v30  ;;  %v5968_v41 = vadd.f32 %v2497_v24, %v7410_v44  ;;  %v4334_v42 = vpop.f32.mrb[21].mxu0 }
 0x212   : > { %v5965_v46 = vadd.f32 %v5962_v20, %v5822_v22 }
 0x213   : > { %v5971_v49 = vadd.f32 %v5968_v41, %v4334_v42  ;;  %v5625_v51 = vpop.f32.mrb[22].mxu1 }
 0x214   : > { %4446 = vst [vmem:[%s7417_s14 + $0xa8] sm:$0xff] %v5965_v46  ;;  %v5974_v53 = vadd.f32 %v5625_v51, %v7410_v44  ;;  %v5825_v55 = vpop.f32.mrb[22].mxu0  ;;  %v2507_v57 = vpop.f32.mrb[23].mxu1 }
 0x215   : > { %4445 = vst [vmem:[%s7417_s14 + $0xa0] sm:$0xff] %v5971_v49  ;;  %v5980_v15 = vadd.f32 %v2507_v57, %v7410_v44  ;;  %v4344_v19 = vpop.f32.mrb[23].mxu0 }
 0x216   : > { %v5977_v4 = vadd.f32 %v5974_v53, %v5825_v55 }
 0x217   : > { %v5983_v27 = vadd.f32 %v5980_v15, %v4344_v19  ;;  %v5628_v60 = vpop.f32.mrb[24].mxu1 }
 0x218   : > { %4448 = vst [vmem:[%s7417_s14 + $0xb8] sm:$0xff] %v5977_v4  ;;  %v5986_v62 = vadd.f32 %v5628_v60, %v7410_v44  ;;  %v5828_v1 = vpop.f32.mrb[24].mxu0  ;;  %v2517_v3 = vpop.f32.mrb[25].mxu1 }
 0x219   : > { %4447 = vst [vmem:[%s7417_s14 + $0xb0] sm:$0xff] %v5983_v27  ;;  %v5992_v36 = vadd.f32 %v2517_v3, %v7410_v44  ;;  %v4354_v47 = vpop.f32.mrb[25].mxu0 }
 0x21a   : > { %v5989_v11 = vadd.f32 %v5986_v62, %v5828_v1 }
 0x21b   : > { %v5995_v25 = vadd.f32 %v5992_v36, %v4354_v47  ;;  %v5631_v28 = vpop.f32.mrb[26].mxu1 }
 0x21c   : > { %4450 = vst [vmem:[%s7417_s14 + $0xc8] sm:$0xff] %v5989_v11  ;;  %v5998_v29 = vadd.f32 %v5631_v28, %v7410_v44  ;;  %v5831_v31 = vpop.f32.mrb[26].mxu0  ;;  %v2527_v32 = vpop.f32.mrb[27].mxu1 }
 0x21d   : > { %4449 = vst [vmem:[%s7417_s14 + $0xc0] sm:$0xff] %v5995_v25  ;;  %v6004_v33 = vadd.f32 %v2527_v32, %v7410_v44  ;;  %v4364_v45 = vpop.f32.mrb[27].mxu0 }
 0x21e   : > { %v6001_v50 = vadd.f32 %v5998_v29, %v5831_v31 }
 0x21f   : > { %v6007_v52 = vadd.f32 %v6004_v33, %v4364_v45  ;;  %v5634_v54 = vpop.f32.mrb[28].mxu1 }
 0x220   : > { %4452 = vst [vmem:[%s7417_s14 + $0xd8] sm:$0xff] %v6001_v50  ;;  %v6010_v56 = vadd.f32 %v5634_v54, %v7410_v44  ;;  %v5834_v59 = vpop.f32.mrb[28].mxu0  ;;  %v2537_v61 = vpop.f32.mrb[29].mxu1 }
 0x221   : > { %4451 = vst [vmem:[%s7417_s14 + $0xd0] sm:$0xff] %v6007_v52  ;;  %v6016_v0 = vadd.f32 %v2537_v61, %v7410_v44  ;;  %v4374_v2 = vpop.f32.mrb[29].mxu0 }
 0x222   : > { %v6013_v10 = vadd.f32 %v6010_v56, %v5834_v59 }
 0x223   : > { %v6019_v18 = vadd.f32 %v6016_v0, %v4374_v2  ;;  %v5637_v34 = vpop.f32.mrb[30].mxu1 }
 0x224   : > { %4454 = vst [vmem:[%s7417_s14 + $0xe8] sm:$0xff] %v6013_v10  ;;  %v6022_v35 = vadd.f32 %v5637_v34, %v7410_v44  ;;  %v5837_v37 = vpop.f32.mrb[30].mxu0  ;;  %v2547_v38 = vpop.f32.mrb[31].mxu1 }
 0x225   : > { %4453 = vst [vmem:[%s7417_s14 + $0xe0] sm:$0xff] %v6019_v18  ;;  %v6028_v40 = vadd.f32 %v2547_v38, %v7410_v44  ;;  %v4384_v43 = vpop.f32.mrb[31].mxu0 }
 0x226   : > { %v6025_v58 = vadd.f32 %v6022_v35, %v5837_v37 }
 0x227   : > { %v6031_v63 = vadd.f32 %v6028_v40, %v4384_v43 }
 0x228   : > { %4456 = vst [vmem:[%s7417_s14 + $0xf8] sm:$0xff] %v6025_v58 }
 0x229   : > { %4455 = vst [vmem:[%s7417_s14 + $0xf0] sm:$0xff] %v6031_v63 }
 0x22a PF: > { %s15_s17 = sadd.s32 1, %s6343_s17   ;;  %s7624_s15 = smov %s6339_s16 }
 0x22b   : > { %p12_p2 = scmp.ge.s32.totalorder %s15_s17, 4   ;;  %s7625_s16 = smov %s7627_s19 }
 0x22d   :  { %14 = sbr.rel (!%p12_p2) target bundleno = 2 (0x2), region = 87 }
 0x234   :  { %4484 = vsyncpa [#allocation3], 1 }
 0x235   :  { %4486 = vsyncpa [#allocation3 + $0x1], 1 }

</bundles_post_ra>
